<compile_context>
chip_gen: v5e
topology: v5e:2x2
jax: 0.10.0
libtpu: 0.0.40
codegen_flags: <defaults>
</compile_context>

<pallas_src>
import functools
import math

import jax
import jax.numpy as jnp
from jax import lax
from jax.experimental import pallas as pl
from jax.experimental.pallas import tpu as pltpu


def _round_up(x, m):
    return ((x + m - 1) // m) * m


def _pick_tile(dim, preferred, aligns=(256, 128)):
    """Largest tile <= preferred that is align-multiple and divides dim.
    Falls back to the full dim (block == full array dim is always legal)."""
    if dim <= preferred:
        return dim
    for a in aligns:
        if dim % a != 0:
            continue
        t = (preferred // a) * a
        while t >= a:
            if dim % t == 0:
                return t
            t -= a
    return dim


# ----------------------------------------------------------------------------
# Kernel 1: Conv1D (x @ W + b) -- c_attn and c_proj projections.
# Grid (M//tm, N//tn), both "parallel"; K kept whole; bf16 MXU, f32 accumulate.
# ----------------------------------------------------------------------------
def _linear_kernel(x_ref, w_ref, b_ref, o_ref, *, compute_dtype):
    x = x_ref[...].astype(compute_dtype)
    w = w_ref[...].astype(compute_dtype)
    acc = jnp.dot(x, w, preferred_element_type=jnp.float32)
    o_ref[...] = (acc + b_ref[...].astype(jnp.float32)).astype(o_ref.dtype)


def pallas_linear(x2d, w, b, *, tm=512, tn=512, compute_dtype=jnp.bfloat16):
    """x2d: [M, K], w: [K, N], b: [N] -> [M, N]."""
    M, K = x2d.shape
    N = w.shape[1]

    # M tiling: pad rows so an MXU-aligned tile always divides M (no silent
    # fallback to a single giant block for awkward B*T).
    if M > tm:
        tm_eff = tm
        Mp = _round_up(M, tm_eff)
        if Mp != M:
            x2d = jnp.pad(x2d, ((0, Mp - M), (0, 0)))
    else:
        tm_eff, Mp = M, M

    # N tiling: prefer 256-aligned (v6e/v7x MXU), then 128, else full N.
    tn_eff = _pick_tile(N, tn, aligns=(256, 128))

    b2 = b.reshape(1, N)
    itemsize = x2d.dtype.itemsize
    cost = pl.CostEstimate(
        flops=2 * Mp * K * N,
        transcendentals=0,
        bytes_accessed=(Mp * K + K * N + Mp * N + N) * itemsize,
    )

    out = pl.pallas_call(
        functools.partial(_linear_kernel, compute_dtype=compute_dtype),
        out_shape=jax.ShapeDtypeStruct((Mp, N), x2d.dtype),
        grid=(Mp // tm_eff, N // tn_eff),
        in_specs=[
            pl.BlockSpec((tm_eff, K), lambda i, j: (i, 0)),
            pl.BlockSpec((K, tn_eff), lambda i, j: (0, j)),
            pl.BlockSpec((1, tn_eff), lambda i, j: (0, j)),
        ],
        out_specs=pl.BlockSpec((tm_eff, tn_eff), lambda i, j: (i, j)),
        compiler_params=pltpu.CompilerParams(
            dimension_semantics=("parallel", "parallel")
        ),
        cost_estimate=cost,
    )(x2d, w, b2)

    return out[:M] if Mp != M else out


# ----------------------------------------------------------------------------
# Kernel 2: flash-style causal multi-head attention on packed qkv.
#   grid = (B, T//tq, T//tk); kv axis is an online-softmax reduction.
#   q/k/v refs are channel-block views of the same packed [B, T, 3C] array.
# ----------------------------------------------------------------------------
def _attn_kernel(q_ref, k_ref, v_ref, o_ref, m_sc, l_sc, acc_sc, *,
                 n_head, scale, masked_bias, q_base, k_base, v_base,
                 compute_dtype):
    ki = pl.program_id(2)
    nk = pl.num_programs(2)
    tq = q_ref.shape[1]
    tk = k_ref.shape[1]
    C = o_ref.shape[-1]
    Dh = C // n_head

    @pl.when(ki == 0)
    def _():
        m_sc[...] = jnp.full_like(m_sc, -jnp.inf)
        l_sc[...] = jnp.zeros_like(l_sc)
        acc_sc[...] = jnp.zeros_like(acc_sc)

    q_start = pl.program_id(1) * tq
    k_start = ki * tk

    # Skip KV blocks strictly above the causal diagonal (saves MXU + exp work).
    @pl.when(k_start <= q_start + tq - 1)
    def _():
        row = q_start + lax.broadcasted_iota(jnp.int32, (tq, tk), 0)
        col = k_start + lax.broadcasted_iota(jnp.int32, (tq, tk), 1)
        causal = col <= row
        inv_sqrt = jnp.float32(1.0 / math.sqrt(Dh))

        for h in range(n_head):
            lo = h * Dh
            q = q_ref[0, :, q_base + lo:q_base + lo + Dh].astype(jnp.float32)
            if scale:
                # Fold 1/sqrt(Dh) into q (tq*Dh work, not tq*tk).
                q = q * inv_sqrt
            k = k_ref[0, :, k_base + lo:k_base + lo + Dh]

            # scores = q @ k^T : contraction on last dims (no K transpose).
            s = lax.dot_general(
                q.astype(compute_dtype), k.astype(compute_dtype),
                dimension_numbers=(((1,), (1,)), ((), ())),
                preferred_element_type=jnp.float32,
            )
            s = jnp.where(causal, s, jnp.float32(masked_bias))

            # Online softmax statistics (all f32).
            m_prev = m_sc[h]
            m_new = jnp.maximum(m_prev, jnp.max(s, axis=-1, keepdims=True))
            alpha = jnp.exp(m_prev - m_new)
            p = jnp.exp(s - m_new)
            l_sc[h] = alpha * l_sc[h] + jnp.sum(p, axis=-1, keepdims=True)

            v = v_ref[0, :, v_base + lo:v_base + lo + Dh]
            pv = jnp.dot(p.astype(compute_dtype), v.astype(compute_dtype),
                         preferred_element_type=jnp.float32)
            # Accumulate straight into the lane-dense (tq, C) f32 scratch —
            # no per-head list, no end-of-kernel concatenate.
            acc_sc[:, lo:lo + Dh] = alpha * acc_sc[:, lo:lo + Dh] + pv
            m_sc[h] = m_new

    @pl.when(ki == nk - 1)
    def _():
        for h in range(n_head):
            lo = h * Dh
            # Exact divide for parity with the reference softmax.
            o_ref[0, :, lo:lo + Dh] = (
                acc_sc[:, lo:lo + Dh] / l_sc[h]).astype(o_ref.dtype)


def pallas_causal_attention(qkv, *, n_head, scale, tq=256, tk=256,
                            compute_dtype=jnp.bfloat16):
    """qkv: [B, T, 3C] packed -> merged-head attention output [B, T, C]."""
    B, T, C3 = qkv.shape
    C = C3 // 3
    Dh = C // n_head

    tq = _pick_tile(T, tq, aligns=(256, 128, 64, 32, 16, 8))
    tk = _pick_tile(T, tk, aligns=(256, 128, 64, 32, 16, 8))
    nq, nk = T // tq, T // tk

    if C % 128 == 0:
        # Three lane-dense C-wide views of the same packed array.
        cw = C
        q_map = lambda b, qi, ki: (b, qi, 0)
        k_map = lambda b, qi, ki: (b, ki, 1)
        v_map = lambda b, qi, ki: (b, ki, 2)
        bases = (0, 0, 0)
    else:
        # Packed fallback (3C-wide blocks; kernel slices with channel offsets).
        cw = C3
        q_map = lambda b, qi, ki: (b, qi, 0)
        k_map = lambda b, qi, ki: (b, ki, 0)
        v_map = lambda b, qi, ki: (b, ki, 0)
        bases = (0, C, 2 * C)

    kern = functools.partial(
        _attn_kernel, n_head=n_head, scale=scale, masked_bias=-10000.0,
        q_base=bases[0], k_base=bases[1], v_base=bases[2],
        compute_dtype=compute_dtype)

    itemsize = qkv.dtype.itemsize
    cost = pl.CostEstimate(
        flops=4 * B * n_head * T * T * Dh,          # qk^T + p@v (upper bound)
        transcendentals=B * n_head * T * T,          # exp
        bytes_accessed=(B * T * C3 + B * T * C) * itemsize,
    )

    return pl.pallas_call(
        kern,
        out_shape=jax.ShapeDtypeStruct((B, T, C), qkv.dtype),
        grid=(B, nq, nk),
        in_specs=[
            pl.BlockSpec((1, tq, cw), q_map),
            pl.BlockSpec((1, tk, cw), k_map),
            pl.BlockSpec((1, tk, cw), v_map),
        ],
        out_specs=pl.BlockSpec((1, tq, C), lambda b, qi, ki: (b, qi, 0)),
        scratch_shapes=[
            pltpu.VMEM((n_head, tq, 1), jnp.float32),   # running max m
            pltpu.VMEM((n_head, tq, 1), jnp.float32),   # running sum l
            pltpu.VMEM((tq, C), jnp.float32),           # merged-head accumulator
        ],
        compiler_params=pltpu.CompilerParams(
            dimension_semantics=("parallel", "parallel", "arbitrary")
        ),
        cost_estimate=cost,
    )(qkv, qkv, qkv)


# ----------------------------------------------------------------------------
# Full module forward (no HBM splits / transposes between the kernels).
# ----------------------------------------------------------------------------
def attention_forward(hidden_states, params, *, n_head, scale=False,
                      compute_dtype=jnp.bfloat16, tq=256, tk=256,
                      tm=512, tn=512):
    B, T, C = hidden_states.shape

    # c_attn: Conv1D(3*C, C) -> packed qkv [B, T, 3C]
    x2d = hidden_states.reshape(B * T, C)
    qkv = pallas_linear(x2d, params["c_attn_w"], params["c_attn_b"],
                        tm=tm, tn=tn, compute_dtype=compute_dtype)
    qkv = qkv.reshape(B, T, 3 * C)

    # attention with in-kernel head split and merged-head output [B, T, C]
    a = pallas_causal_attention(qkv, n_head=n_head, scale=scale,
                                tq=tq, tk=tk, compute_dtype=compute_dtype)

    # c_proj: Conv1D(C, C); resid_dropout is identity in eval
    out = pallas_linear(a.reshape(B * T, C), params["c_proj_w"],
                        params["c_proj_b"], tm=tm, tn=tn,
                        compute_dtype=compute_dtype)
    return out.reshape(B, T, C)


# ----------------------------------------------------------------------------
# Pure-JAX reference for verification
# ----------------------------------------------------------------------------
def attention_reference(x, params, *, n_head, scale=False):
    B, T, C = x.shape
    Dh = C // n_head
    qkv = x @ params["c_attn_w"] + params["c_attn_b"]
    q, k, v = jnp.split(qkv, 3, axis=-1)
    sh = lambda t: t.reshape(B, T, n_head, Dh).transpose(0, 2, 1, 3)
    q, k, v = sh(q), sh(k), sh(v)
    w = jnp.einsum("bhqd,bhkd->bhqk", q, k)
    if scale:
        w = w / jnp.sqrt(jnp.float32(Dh))
    mask = jnp.tril(jnp.ones((T, T), bool))
    w = jnp.where(mask, w, jnp.float32(-10000.0))
    w = jax.nn.softmax(w, axis=-1)
    a = jnp.einsum("bhqk,bhkd->bhqd", w, v)
    a = a.transpose(0, 2, 1, 3).reshape(B, T, C)
    return a @ params["c_proj_w"] + params["c_proj_b"]


if __name__ == "__main__":
    # Small shapes consistent with the module: nx = C = 128, n_ctx = T = 256,
    # n_head = 4 (Dh = 32), batch = 2. tq = tk = 128 so the multi-KV-block
    # online softmax + causal block skipping paths are exercised.
    B, T, C, H = 2, 256, 128, 4
    scale = True  # GPT-2 uses scale=True; module default (False) also supported

    key = jax.random.PRNGKey(0)
    k_x, k_w1, k_b1, k_w2, k_b2 = jax.random.split(key, 5)

    x = jax.random.normal(k_x, (B, T, C), dtype=jnp.float32)
    params = {
        "c_attn_w": 0.02 * jax.random.normal(k_w1, (C, 3 * C), dtype=jnp.float32),
        "c_attn_b": 0.02 * jax.random.normal(k_b1, (3 * C,), dtype=jnp.float32),
        "c_proj_w": 0.02 * jax.random.normal(k_w2, (C, C), dtype=jnp.float32),
        "c_proj_b": 0.02 * jax.random.normal(k_b2, (C,), dtype=jnp.float32),
    }

    ref = jax.block_until_ready(
        attention_reference(x, params, n_head=H, scale=scale))

    # 1) f32 MXU path -- tight semantic check of the kernels.
    out_f32 = attention_forward(x, params, n_head=H, scale=scale,
                                compute_dtype=jnp.float32, tq=128, tk=128)
    out_f32 = jax.block_until_ready(out_f32)
    assert out_f32.shape == (B, T, C)
    assert jnp.allclose(out_f32, ref, rtol=2e-3, atol=2e-3), "f32 mismatch vs reference"

    # 2) default fast path: bf16 MXU inputs, f32 accumulation / softmax stats.
    out_bf16 = attention_forward(x, params, n_head=H, scale=scale,
                                 compute_dtype=jnp.bfloat16, tq=128, tk=128)
    out_bf16 = jax.block_until_ready(out_bf16)
    assert out_bf16.shape == (B, T, C)
    assert jnp.allclose(out_bf16, ref, rtol=2e-2, atol=2e-2), "bf16 mismatch vs reference"

    print("KERNEL_OK")
</pallas_src>

<mosaic_0001>
module attributes {stable_mosaic.version = 11 : i64} {
  func.func @_linear_kernel(%arg0: i32, %arg1: i32, %arg2: memref<512x128xf32, #tpu.memory_space<vmem>>, %arg3: memref<128x384xf32, #tpu.memory_space<vmem>>, %arg4: memref<1x384xf32, #tpu.memory_space<vmem>>, %arg5: memref<512x384xf32, #tpu.memory_space<vmem>>) attributes {dimension_semantics = [#tpu.dimension_semantics<parallel>, #tpu.dimension_semantics<parallel>], iteration_bounds = array<i64: 1, 1>, scalar_prefetch = 0 : i64, scratch_operands = 0 : i64, tpu.core_type = #tpu.core_type<tc>, window_params = [{transform_indices = @transform_0, window_bounds = array<i64: 512, 128>}, {transform_indices = @transform_1, window_bounds = array<i64: 128, 384>}, {transform_indices = @transform_2, window_bounds = array<i64: 1, 384>}, {transform_indices = @transform_3, window_bounds = array<i64: 512, 384>}]} {
    %c0 = arith.constant 0 : index
    %c0_0 = arith.constant 0 : index
    %0 = vector.load %arg2[%c0, %c0_0] : memref<512x128xf32, #tpu.memory_space<vmem>>, vector<512x128xf32>
    %c0_1 = arith.constant 0 : index
    %c0_2 = arith.constant 0 : index
    %1 = vector.load %arg3[%c0_1, %c0_2] : memref<128x384xf32, #tpu.memory_space<vmem>>, vector<128x384xf32>
    %cst = arith.constant dense<0.000000e+00> : vector<512x384xf32>
    %2 = tpu.matmul %0, %1, %cst {dimension_numbers = #tpu.dot_dimension_numbers<[1], [0], [0], [1], [0, 0, 1, 1], [], []>} : vector<512x128xf32>, vector<128x384xf32>, vector<512x384xf32> -> vector<512x384xf32>
    %c0_3 = arith.constant 0 : index
    %c0_4 = arith.constant 0 : index
    %3 = vector.load %arg4[%c0_3, %c0_4] : memref<1x384xf32, #tpu.memory_space<vmem>>, vector<1x384xf32>
    %4 = vector.broadcast %3 : vector<1x384xf32> to vector<512x384xf32>
    %5 = arith.addf %2, %4 : vector<512x384xf32>
    %c0_5 = arith.constant 0 : index
    %c0_6 = arith.constant 0 : index
    %6 = vector.load %arg5[%c0_5, %c0_6] : memref<512x384xf32, #tpu.memory_space<vmem>>, vector<512x384xf32>
    tpu.vector_store %arg5[%c0_5, %c0_6], %5 {strides = array<i32>} : memref<512x384xf32, #tpu.memory_space<vmem>>, vector<512x384xf32>,
    return
  }
  func.func @transform_0(%arg0: i32, %arg1: i32) -> (i32, i32) {
    %c0_i32 = arith.constant 0 : i32
    %c0_i32_0 = arith.constant 0 : i32
    return %arg0, %c0_i32 : i32, i32
  }
  func.func @transform_1(%arg0: i32, %arg1: i32) -> (i32, i32) {
    %c0_i32 = arith.constant 0 : i32
    %c0_i32_0 = arith.constant 0 : i32
    return %c0_i32, %arg1 : i32, i32
  }
  func.func @transform_2(%arg0: i32, %arg1: i32) -> (i32, i32) {
    %c0_i32 = arith.constant 0 : i32
    %c0_i32_0 = arith.constant 0 : i32
    return %c0_i32, %arg1 : i32, i32
  }
  func.func @transform_3(%arg0: i32, %arg1: i32) -> (i32, i32) {
    %c0_i32 = arith.constant 0 : i32
    return %arg0, %arg1 : i32, i32
  }
}

</mosaic_0001>

<bundles_post_ra>
// kernel: tpu_custom_call.1
= control target key start
LH: loop header
LB: loop body
LE: loop exit
PB: predicated region body
PF: predicated region fallthrough
CT: control target
= control target key end

     0   :  { %8 = vsyncpa [#allocation3], 0  ;;  %s1609_s0 = inlined_call_operand.hbm [shape: f32[512,128], index: 0, kind: input, shape index: {}]   ;;  %s1610_s1 = inlined_call_operand.hbm [shape: f32[128,384], index: 1, kind: input, shape index: {}]   ;;  %s1611_s2 = inlined_call_operand.hbm [shape: f32[1,384], index: 2, kind: input, shape index: {}]   ;;  %s1612_s3 = inlined_call_operand.hbm [shape: f32[512,384], index: 3, kind: output, shape index: {}]  }
   0x1   :  { %9 = vsyncpa [#allocation6], 0  ;;  %s28_s14 = sshll.u32 %s1610_s1, 4  ;;  %s29_s14 = int_to_ptr.hbm [resolvable:$true] %s28_s14 }
   0x2   :  { %10 = vsyncpa [#allocation4], 0  ;;  %s1180_s15 = smov [#allocation5]   ;;  %s15_s19 = sshll.u32 %s1609_s0, 4  ;;  %s16_s19 = int_to_ptr.hbm [resolvable:$true] %s15_s19 }
   0x3   :  { %s30_s16 = sshll.u32 %s1180_s15, 4  ;;  %s1181_s20 = smov 384   ;;  %s31_s16 = int_to_ptr.vmem [resolvable:$true] %s30_s16 }
   0x4   :  { %s1182_s21 = smov 24   ;;  %s1183_s22 = smov [#allocation2]  }
   0x5   :  { %36 = dma.hbm_to_vmem [thread:$0]  %s29_s14, 6144, %s31_s16, [#allocation6], %s1181_s20, %s1181_s20, %s1182_s21  }
   0x6   :  { %s17_s23 = sshll.u32 %s1183_s22, 4  ;;  %s1184_s1 = smov 128   ;;  %s18_s23 = int_to_ptr.vmem [resolvable:$true] %s17_s23 }
   0x7   :  { %s1185_s24 = smov 8   ;;  %s42_s27 = sshll.u32 %s1611_s2, 4  ;;  %s43_s27 = int_to_ptr.hbm [resolvable:$true] %s42_s27 }
   0x8   :  { %23 = dma.hbm_to_vmem [thread:$0]  %s16_s19, 8192, %s18_s23, [#allocation3], %s1184_s1, %s1184_s1, %s1185_s24  }
   0x9   :  { %s1186_s28 = smov [#allocation7]  }
   0xa   :  { %s44_s0 = sshll.u32 %s1186_s28, 4  ;;  %s45_s0 = int_to_ptr.vmem [resolvable:$true] %s44_s0 }
   0xb   :  { %47 = dma.hbm_to_vmem [thread:$0]  %s43_s27, 48, %s45_s0, [#allocation6]  }
   0xc   :  { %1174 = dma.done.wait [#allocation3], 8192  }
   0xd   :  { %1175 = vsyncadd [#allocation3], 4294959104 }
   0xe   :  { %1176 = dma.done.wait [#allocation6], 6192  }
   0xf   :  { %1177 = vsyncadd [#allocation6], 4294961104  ;;  %v169_v0 = vld [vmem:[#allocation5 + $0x168] sm:$0xff]  ;;  %v1220_v1 = vld [vmem:[#allocation5 + $0x178] sm:$0xff]  ;;  %s1187_s2 = smov [#allocation8]   ;;  %s1005_s5 = sshll.u32 %s1612_s3, 4  ;;  %s1006_s5 = int_to_ptr.hbm [resolvable:$true] %s1005_s5 }
  0x10   :  { %v166_v2 = vld [vmem:[#allocation5 + $0x150] sm:$0xff]  ;;  %1019 = vmatpush.msra.mxu3 %v169_v0  ;;  %598 = vmatpush.msra.mxu2 %v1220_v1  ;;  %v1223_v3 = vld [vmem:[#allocation5 + $0x160] sm:$0xff]  ;;  %v163_v4 = vld [vmem:[#allocation5 + $0x138] sm:$0xff]  ;;  %s1003_s29 = sshll.u32 %s1187_s2, 4  ;;  %s1004_s29 = int_to_ptr.vmem [resolvable:$true] %s1003_s29 }
  0x11   :  { %v1225_v5 = vld [vmem:[#allocation5 + $0x148] sm:$0xff]  ;;  %180 = vmatpush.msra.mxu0 %v169_v0  ;;  %v1227_v6 = vld [vmem:[#allocation5 + $0x170] sm:$0xff]  ;;  %v1230_v7 = vld [vmem:[#allocation5 + $0x158] sm:$0xff] }
  0x12   :  { %1020 = vmatpush.msra.mxu3 %v166_v2  ;;  %599 = vmatpush.msra.mxu2 %v1223_v3  ;;  %v160_v8 = vld [vmem:[#allocation5 + $0x120] sm:$0xff]  ;;  %v1233_v9 = vld [vmem:[#allocation5 + $0x130] sm:$0xff]  ;;  %v157_v11 = vld [vmem:[#allocation5 + $0x108] sm:$0xff] }
  0x13   :  { %389 = vmatpush.msra.mxu1 %v1227_v6  ;;  %181 = vmatpush.msra.mxu0 %v166_v2  ;;  %v1236_v10 = vld [vmem:[#allocation5 + $0x140] sm:$0xff]  ;;  %v1239_v12 = vld [vmem:[#allocation5 + $0x118] sm:$0xff]  ;;  %v1242_v13 = vld [vmem:[#allocation5 + $0x128] sm:$0xff] }
  0x14   :  { %1021 = vmatpush.msra.mxu3 %v163_v4  ;;  %600 = vmatpush.msra.mxu2 %v1225_v5  ;;  %v154_v14 = vld [vmem:[#allocation5 + $0xf0] sm:$0xff]  ;;  %v1245_v15 = vld [vmem:[#allocation5 + $0x100] sm:$0xff]  ;;  %v151_v17 = vld [vmem:[#allocation5 + $0xd8] sm:$0xff] }
  0x15   :  { %390 = vmatpush.msra.mxu1 %v1230_v7  ;;  %182 = vmatpush.msra.mxu0 %v163_v4  ;;  %v1248_v16 = vld [vmem:[#allocation5 + $0x110] sm:$0xff]  ;;  %v1251_v18 = vld [vmem:[#allocation5 + $0xe8] sm:$0xff]  ;;  %v1254_v19 = vld [vmem:[#allocation5 + $0xf8] sm:$0xff] }
  0x16   :  { %1022 = vmatpush.msra.mxu3 %v160_v8  ;;  %601 = vmatpush.msra.mxu2 %v1233_v9  ;;  %v148_v20 = vld [vmem:[#allocation5 + $0xc0] sm:$0xff]  ;;  %v1257_v21 = vld [vmem:[#allocation5 + $0xd0] sm:$0xff]  ;;  %v145_v23 = vld [vmem:[#allocation5 + $0xa8] sm:$0xff] }
  0x17   :  { %391 = vmatpush.msra.mxu1 %v1236_v10  ;;  %183 = vmatpush.msra.mxu0 %v160_v8  ;;  %v1260_v22 = vld [vmem:[#allocation5 + $0xe0] sm:$0xff]  ;;  %v1263_v24 = vld [vmem:[#allocation5 + $0xb8] sm:$0xff]  ;;  %v1266_v25 = vld [vmem:[#allocation5 + $0xc8] sm:$0xff] }
  0x18   :  { %1023 = vmatpush.msra.mxu3 %v157_v11  ;;  %602 = vmatpush.msra.mxu2 %v1239_v12  ;;  %v142_v26 = vld [vmem:[#allocation5 + $0x90] sm:$0xff]  ;;  %v1269_v27 = vld [vmem:[#allocation5 + $0xa0] sm:$0xff]  ;;  %v139_v29 = vld [vmem:[#allocation5 + $0x78] sm:$0xff] }
  0x19   :  { %392 = vmatpush.msra.mxu1 %v1242_v13  ;;  %184 = vmatpush.msra.mxu0 %v157_v11  ;;  %v1272_v28 = vld [vmem:[#allocation5 + $0xb0] sm:$0xff]  ;;  %v1275_v30 = vld [vmem:[#allocation5 + $0x88] sm:$0xff]  ;;  %v1278_v31 = vld [vmem:[#allocation5 + $0x98] sm:$0xff] }
  0x1a   :  { %1024 = vmatpush.msra.mxu3 %v154_v14  ;;  %603 = vmatpush.msra.mxu2 %v1245_v15  ;;  %v136_v32 = vld [vmem:[#allocation5 + $0x60] sm:$0xff]  ;;  %v1281_v33 = vld [vmem:[#allocation5 + $0x70] sm:$0xff]  ;;  %v133_v35 = vld [vmem:[#allocation5 + $0x48] sm:$0xff] }
  0x1b   :  { %393 = vmatpush.msra.mxu1 %v1248_v16  ;;  %185 = vmatpush.msra.mxu0 %v154_v14  ;;  %v1284_v34 = vld [vmem:[#allocation5 + $0x80] sm:$0xff]  ;;  %v1287_v36 = vld [vmem:[#allocation5 + $0x58] sm:$0xff]  ;;  %v137_v37 = vld [vmem:[#allocation5 + $0x68] sm:$0xff] }
  0x1c   :  { %1025 = vmatpush.msra.mxu3 %v151_v17  ;;  %604 = vmatpush.msra.mxu2 %v1251_v18  ;;  %v130_v38 = vld [vmem:[#allocation5 + $0x30] sm:$0xff]  ;;  %v1291_v39 = vld [vmem:[#allocation5 + $0x40] sm:$0xff]  ;;  %v127_v41 = vld [vmem:[#allocation5 + $0x18] sm:$0xff] }
  0x1d   :  { %394 = vmatpush.msra.mxu1 %v1254_v19  ;;  %186 = vmatpush.msra.mxu0 %v151_v17  ;;  %v134_v40 = vld [vmem:[#allocation5 + $0x50] sm:$0xff]  ;;  %v1294_v42 = vld [vmem:[#allocation5 + $0x28] sm:$0xff]  ;;  %v131_v43 = vld [vmem:[#allocation5 + $0x38] sm:$0xff] }
  0x1e   :  { %1026 = vmatpush.msra.mxu3 %v148_v20  ;;  %605 = vmatpush.msra.mxu2 %v1257_v21  ;;  %v124_v44 = vld [vmem:[#allocation5] sm:$0xff]  ;;  %v1297_v45 = vld [vmem:[#allocation5 + $0x10] sm:$0xff]  ;;  %v125_v49 = vld [vmem:[#allocation5 + $0x8] sm:$0xff] }
  0x1f   :  { %395 = vmatpush.msra.mxu1 %v1260_v22  ;;  %187 = vmatpush.msra.mxu0 %v148_v20  ;;  %v1300_v46 = vld [vmem:[#allocation2 + $0x180] sm:$0xff]  ;;  %v1306_v50 = vld [vmem:[#allocation2 + $0x188] sm:$0xff]  ;;  %v1312_v52 = vld [vmem:[#allocation2 + $0x190] sm:$0xff] }
  0x20   :  { %1027 = vmatpush.msra.mxu3 %v145_v23  ;;  %606 = vmatpush.msra.mxu2 %v1263_v24  ;;  %v60_v47 = vld [vmem:[#allocation2] sm:$0xff]  ;;  %v61_v51 = vld [vmem:[#allocation2 + $0x8] sm:$0xff]  ;;  %v62_v53 = vld [vmem:[#allocation2 + $0x10] sm:$0xff] }
  0x21   :  { %396 = vmatpush.msra.mxu1 %v1266_v25  ;;  %188 = vmatpush.msra.mxu0 %v145_v23  ;;  %v128_v48 = vld [vmem:[#allocation5 + $0x20] sm:$0xff]  ;;  %v1319_v54 = vld [vmem:[#allocation2 + $0x198] sm:$0xff]  ;;  %v1329_v58 = vld [vmem:[#allocation2 + $0x1a8] sm:$0xff] }
  0x22   :  { %1028 = vmatpush.msra.mxu3 %v142_v26  ;;  %607 = vmatpush.msra.mxu2 %v1269_v27  ;;  %v63_v55 = vld [vmem:[#allocation2 + $0x18] sm:$0xff]  ;;  %v1324_v56 = vld [vmem:[#allocation2 + $0x1a0] sm:$0xff]  ;;  %v65_v59 = vld [vmem:[#allocation2 + $0x28] sm:$0xff] }
  0x23   :  { %397 = vmatpush.msra.mxu1 %v1272_v28  ;;  %189 = vmatpush.msra.mxu0 %v142_v26  ;;  %v64_v57 = vld [vmem:[#allocation2 + $0x20] sm:$0xff]  ;;  %v1335_v60 = vld [vmem:[#allocation2 + $0x1b0] sm:$0xff]  ;;  %v1342_v62 = vld [vmem:[#allocation2 + $0x1b8] sm:$0xff] }
  0x24   :  { %1029 = vmatpush.msra.mxu3 %v139_v29  ;;  %608 = vmatpush.msra.mxu2 %v1275_v30  ;;  %v66_v61 = vld [vmem:[#allocation2 + $0x30] sm:$0xff]  ;;  %v67_v63 = vld [vmem:[#allocation2 + $0x38] sm:$0xff]  ;;  %v1349_v0 = vld [vmem:[#allocation2 + $0x1c0] sm:$0xff] }
  0x25   :  { %398 = vmatpush.msra.mxu1 %v1278_v31  ;;  %190 = vmatpush.msra.mxu0 %v139_v29  ;;  %v1355_v2 = vld [vmem:[#allocation2 + $0x1c8] sm:$0xff]  ;;  %v1358_v4 = vld [vmem:[#allocation2 + $0x1d0] sm:$0xff]  ;;  %v1364_v8 = vld [vmem:[#allocation2 + $0x1e0] sm:$0xff] }
  0x26   :  { %1030 = vmatpush.msra.mxu3 %v136_v32  ;;  %609 = vmatpush.msra.mxu2 %v1281_v33  ;;  %v73_v11 = vld [vmem:[#allocation2 + $0x68] sm:$0xff]  ;;  %v1373_v14 = vld [vmem:[#allocation2 + $0x1f8] sm:$0xff]  ;;  %v76_v17 = vld [vmem:[#allocation2 + $0x80] sm:$0xff] }
  0x27   :  { %399 = vmatpush.msra.mxu1 %v1284_v34  ;;  %191 = vmatpush.msra.mxu0 %v136_v32  ;;  %v77_v29 = vld [vmem:[#allocation2 + $0x88] sm:$0xff] }
  0x28   :  { %1031 = vmatpush.msra.mxu3 %v133_v35  ;;  %610 = vmatpush.msra.mxu2 %v1287_v36 }
  0x29   :  { %400 = vmatpush.msra.mxu1 %v137_v37  ;;  %192 = vmatpush.msra.mxu0 %v133_v35 }
  0x2a   :  { %1032 = vmatpush.msra.mxu3 %v130_v38  ;;  %611 = vmatpush.msra.mxu2 %v1291_v39 }
  0x2b   :  { %401 = vmatpush.msra.mxu1 %v134_v40  ;;  %193 = vmatpush.msra.mxu0 %v130_v38  ;;  %v78_v38 = vld [vmem:[#allocation2 + $0x90] sm:$0xff] }
  0x2c   :  { %1033 = vmatpush.msra.mxu3 %v127_v41  ;;  %612 = vmatpush.msra.mxu2 %v1294_v42 }
  0x2d   :  { %402 = vmatpush.msra.mxu1 %v131_v43  ;;  %194 = vmatpush.msra.mxu0 %v127_v41 }
  0x2e   :  { %1034 = vmatpush.msra.mxu3 %v124_v44  ;;  %613 = vmatpush.msra.mxu2 %v1297_v45 }
  0x2f   :  { %340 = vmatmul.f32.vlgmr.msra.gmra.mxu3 %v1300_v46  ;;  %614 = vmatmul.f32.vlgmr.msra.gmra.mxu2 %v60_v47 }
  0x30   :  { %1035 = vmatpush.msrb.mxu3 %v1227_v6  ;;  %403 = vmatpush.msra.mxu1 %v128_v48  ;;  %v1361_v6 = vld [vmem:[#allocation2 + $0x1d8] sm:$0xff] }
  0x31   :  { %195 = vmatpush.msra.mxu0 %v124_v44 }
  0x32   :  { %404 = vmatpush.msra.mxu1 %v125_v49  ;;  %196 = vmatmul.f32.vlgmr.msra.gmra.mxu0 %v60_v47 }
  0x33   :  { %405 = vmatmul.f32.vlgmr.msra.gmra.mxu1 %v60_v47  ;;  %1036 = vmatpush.msrb.mxu3 %v1230_v7  ;;  %v71_v7 = vld [vmem:[#allocation2 + $0x58] sm:$0xff] }
  0x35   :  { %1037 = vmatpush.msrb.mxu3 %v1236_v10  ;;  %v1367_v10 = vld [vmem:[#allocation2 + $0x1e8] sm:$0xff] }
  0x37   :  { %343 = vmatmul.f32.gmra.mxu3 %v1306_v50  ;;  %617 = vmatmul.f32.gmra.mxu2 %v61_v51 }
  0x38   :  { %1038 = vmatpush.msrb.mxu3 %v1242_v13  ;;  %v74_v13 = vld [vmem:[#allocation2 + $0x70] sm:$0xff] }
  0x3a   :  { %199 = vmatmul.f32.gmra.mxu0 %v61_v51  ;;  %1039 = vmatpush.msrb.mxu3 %v1248_v16  ;;  %v172_v16 = vld [vmem:[#allocation7] sm:$0x7] }
  0x3b   :  { %408 = vmatmul.f32.gmra.mxu1 %v61_v51 }
  0x3c   :  { %1040 = vmatpush.msrb.mxu3 %v1254_v19  ;;  %v1378_v19 = vperm.slane %v172_v16, 1 }
  0x3e   :  { %1041 = vmatpush.msrb.mxu3 %v1260_v22 }
  0x3f   :  { %346 = vmatmul.f32.gmra.mxu3 %v1312_v52  ;;  %620 = vmatmul.f32.gmra.mxu2 %v62_v53 }
  0x40   :  { %1042 = vmatpush.msrb.mxu3 %v1266_v25 }
  0x42   :  { %202 = vmatmul.f32.gmra.mxu0 %v62_v53  ;;  %1043 = vmatpush.msrb.mxu3 %v1272_v28 }
  0x43   :  { %411 = vmatmul.f32.gmra.mxu1 %v62_v53 }
  0x44   :  { %1044 = vmatpush.msrb.mxu3 %v1278_v31 }
  0x46   :  { %1045 = vmatpush.msrb.mxu3 %v1284_v34 }
  0x47   :  { %349 = vmatmul.f32.gmra.mxu3 %v1319_v54  ;;  %623 = vmatmul.f32.gmra.mxu2 %v63_v55 }
  0x48   :  { %1046 = vmatpush.msrb.mxu3 %v137_v37 }
  0x4a   :  { %205 = vmatmul.f32.gmra.mxu0 %v63_v55  ;;  %1047 = vmatpush.msrb.mxu3 %v134_v40 }
  0x4b   :  { %414 = vmatmul.f32.gmra.mxu1 %v63_v55 }
  0x4c   :  { %1048 = vmatpush.msrb.mxu3 %v131_v43 }
  0x4e   :  { %1049 = vmatpush.msrb.mxu3 %v128_v48  ;;  %v79_v48 = vld [vmem:[#allocation2 + $0x98] sm:$0xff] }
  0x4f   :  { %352 = vmatmul.f32.gmra.mxu3 %v1324_v56  ;;  %626 = vmatmul.f32.gmra.mxu2 %v64_v57 }
  0x50   :  { %1050 = vmatpush.msrb.mxu3 %v125_v49 }
  0x52   :  { %1051 = vmatpush.msra.mxu3 %v1220_v1  ;;  %208 = vmatmul.f32.gmra.mxu0 %v64_v57  ;;  %v68_v1 = vld [vmem:[#allocation2 + $0x40] sm:$0xff] }
  0x53   :  { %417 = vmatmul.f32.gmra.mxu1 %v64_v57 }
  0x54   :  { %1052 = vmatpush.msra.mxu3 %v1223_v3  ;;  %v69_v3 = vld [vmem:[#allocation2 + $0x48] sm:$0xff] }
  0x56   :  { %1053 = vmatpush.msra.mxu3 %v1225_v5  ;;  %v70_v5 = vld [vmem:[#allocation2 + $0x50] sm:$0xff] }
  0x57   :  { %355 = vmatmul.f32.gmra.mxu3 %v1329_v58  ;;  %629 = vmatmul.f32.gmra.mxu2 %v65_v59 }
  0x58   :  { %1054 = vmatpush.msra.mxu3 %v1233_v9  ;;  %v72_v9 = vld [vmem:[#allocation2 + $0x60] sm:$0xff] }
  0x5a   :  { %211 = vmatmul.f32.gmra.mxu0 %v65_v59  ;;  %1055 = vmatpush.msra.mxu3 %v1239_v12  ;;  %v1370_v12 = vld [vmem:[#allocation2 + $0x1f0] sm:$0xff] }
  0x5b   :  { %420 = vmatmul.f32.gmra.mxu1 %v65_v59 }
  0x5c   :  { %1056 = vmatpush.msra.mxu3 %v1245_v15  ;;  %v75_v15 = vld [vmem:[#allocation2 + $0x78] sm:$0xff] }
  0x5e   :  { %1057 = vmatpush.msra.mxu3 %v1251_v18  ;;  %v1376_v18 = vperm.slane %v172_v16, 0 }
  0x5f   :  { %358 = vmatmul.f32.gmra.mxu3 %v1335_v60  ;;  %632 = vmatmul.f32.gmra.mxu2 %v66_v61 }
  0x60   :  { %1058 = vmatpush.msra.mxu3 %v1257_v21  ;;  %v1381_v21 = vperm.slane %v172_v16, 2 }
  0x62   :  { %214 = vmatmul.f32.gmra.mxu0 %v66_v61  ;;  %1059 = vmatpush.msra.mxu3 %v1263_v24 }
  0x63   :  { %423 = vmatmul.f32.gmra.mxu1 %v66_v61 }
  0x64   :  { %1060 = vmatpush.msra.mxu3 %v1269_v27 }
  0x66   :  { %1061 = vmatpush.msra.mxu3 %v1275_v30 }
  0x67   :  { %361 = vmatmul.f32.gmra.mxu3 %v1342_v62  ;;  %635 = vmatmul.f32.gmra.mxu2 %v67_v63 }
  0x68   :  { %1062 = vmatpush.msra.mxu3 %v1281_v33 }
  0x6a   :  { %217 = vmatmul.f32.gmra.mxu0 %v67_v63  ;;  %1063 = vmatpush.msra.mxu3 %v1287_v36 }
  0x6b   :  { %426 = vmatmul.f32.gmra.mxu1 %v67_v63 }
  0x6c   :  { %1064 = vmatpush.msra.mxu3 %v1291_v39 }
  0x6e   :  { %1065 = vmatpush.msra.mxu3 %v1294_v42 }
  0x6f   :  { %364 = vmatmul.f32.gmra.mxu3 %v1349_v0  ;;  %638 = vmatmul.f32.gmra.mxu2 %v68_v1 }
  0x70   :  { %1066 = vmatpush.msra.mxu3 %v1297_v45 }
  0x72   :  { %220 = vmatmul.f32.gmra.mxu0 %v68_v1 }
  0x73   :  { %429 = vmatmul.f32.gmra.mxu1 %v68_v1  ;;  %v80_v1 = vld [vmem:[#allocation2 + $0xa0] sm:$0xff] }
  0x77   :  { %367 = vmatmul.f32.gmra.mxu3 %v1355_v2  ;;  %641 = vmatmul.f32.gmra.mxu2 %v69_v3 }
  0x7a   :  { %223 = vmatmul.f32.gmra.mxu0 %v69_v3 }
  0x7b   :  { %432 = vmatmul.f32.gmra.mxu1 %v69_v3 }
  0x7f   :  { %370 = vmatmul.f32.gmra.mxu3 %v1358_v4  ;;  %644 = vmatmul.f32.gmra.mxu2 %v70_v5 }
  0x82   :  { %226 = vmatmul.f32.gmra.mxu0 %v70_v5 }
  0x83   :  { %435 = vmatmul.f32.gmra.mxu1 %v70_v5 }
  0x87   :  { %373 = vmatmul.f32.gmra.mxu3 %v1361_v6  ;;  %647 = vmatmul.f32.gmra.mxu2 %v71_v7 }
  0x8a   :  { %229 = vmatmul.f32.gmra.mxu0 %v71_v7 }
  0x8b   :  { %438 = vmatmul.f32.gmra.mxu1 %v71_v7 }
  0x8f   :  { %376 = vmatmul.f32.gmra.mxu3 %v1364_v8  ;;  %650 = vmatmul.f32.gmra.mxu2 %v72_v9 }
  0x92   :  { %232 = vmatmul.f32.gmra.mxu0 %v72_v9 }
  0x93   :  { %441 = vmatmul.f32.gmra.mxu1 %v72_v9 }
  0x97   :  { %379 = vmatmul.f32.gmra.mxu3 %v1367_v10  ;;  %653 = vmatmul.f32.gmra.mxu2 %v73_v11 }
  0x9a   :  { %235 = vmatmul.f32.gmra.mxu0 %v73_v11 }
  0x9b   :  { %444 = vmatmul.f32.gmra.mxu1 %v73_v11 }
  0x9f   :  { %382 = vmatmul.f32.gmra.mxu3 %v1370_v12  ;;  %656 = vmatmul.f32.gmra.mxu2 %v74_v13 }
  0xa2   :  { %238 = vmatmul.f32.gmra.mxu0 %v74_v13 }
  0xa3   :  { %447 = vmatmul.f32.gmra.mxu1 %v74_v13 }
  0xa7   :  { %385 = vmatmul.f32.gmra.mxu3 %v1373_v14  ;;  %659 = vmatmul.f32.gmra.mxu2 %v75_v15 }
  0xaa   :  { %241 = vmatmul.f32.gmra.mxu0 %v75_v15 }
  0xab   :  { %450 = vmatmul.f32.gmra.mxu1 %v75_v15 }
  0xaf   :  { %549 = vmatmul.f32.vlgmr.msrb.gmra.mxu3 %v1300_v46  ;;  %662 = vmatmul.f32.gmra.mxu2 %v76_v17  ;;  %v197_v20 = vpop.f32.mrf.mxu0 }
  0xb0   :  { %v198_v22 = vadd.f32 %v197_v20, %v1376_v18  ;;  %v406_v23 = vpop.f32.mrf.mxu1 }
  0xb1   :  { %v407_v24 = vadd.f32 %v406_v23, %v1378_v19 }
  0xb2   :  { %807 = vst [vmem:[#allocation8] sm:$0xff] %v198_v22  ;;  %v341_v25 = vpop.f32.mrf.mxu3  ;;  %v615_v26 = vpop.f32.mrf.mxu2  ;;  %244 = vmatmul.f32.gmra.mxu0 %v76_v17 }
  0xb3   :  { %v342_v27 = vadd.f32 %v341_v25, %v1376_v18  ;;  %808 = vst [vmem:[#allocation8 + $0x8] sm:$0xff] %v407_v24  ;;  %v616_v28 = vadd.f32 %v615_v26, %v1381_v21  ;;  %453 = vmatmul.f32.gmra.mxu1 %v76_v17  ;;  %v81_v17 = vld [vmem:[#allocation2 + $0xa8] sm:$0xff] }
  0xb5   :  { %951 = vst [vmem:[#allocation8 + $0x480] sm:$0xff] %v342_v27 }
  0xb6   :  { %809 = vst [vmem:[#allocation8 + $0x10] sm:$0xff] %v616_v28 }
  0xb7   :  { %552 = vmatmul.f32.gmra.mxu3 %v1306_v50  ;;  %665 = vmatmul.f32.gmra.mxu2 %v77_v29  ;;  %v200_v30 = vpop.f32.mrf.mxu0 }
  0xb8   :  { %v201_v31 = vadd.f32 %v200_v30, %v1376_v18  ;;  %v409_v32 = vpop.f32.mrf.mxu1 }
  0xb9   :  { %v410_v33 = vadd.f32 %v409_v32, %v1378_v19 }
  0xba   :  { %810 = vst [vmem:[#allocation8 + $0x18] sm:$0xff] %v201_v31  ;;  %v344_v34 = vpop.f32.mrf.mxu3  ;;  %v618_v35 = vpop.f32.mrf.mxu2  ;;  %247 = vmatmul.f32.gmra.mxu0 %v77_v29 }
  0xbb   :  { %v345_v36 = vadd.f32 %v344_v34, %v1376_v18  ;;  %811 = vst [vmem:[#allocation8 + $0x20] sm:$0xff] %v410_v33  ;;  %v619_v37 = vadd.f32 %v618_v35, %v1381_v21  ;;  %456 = vmatmul.f32.gmra.mxu1 %v77_v29  ;;  %v82_v29 = vld [vmem:[#allocation2 + $0xb0] sm:$0xff] }
  0xbd   :  { %954 = vst [vmem:[#allocation8 + $0x498] sm:$0xff] %v345_v36 }
  0xbe   :  { %812 = vst [vmem:[#allocation8 + $0x28] sm:$0xff] %v619_v37 }
  0xbf   :  { %555 = vmatmul.f32.gmra.mxu3 %v1312_v52  ;;  %668 = vmatmul.f32.gmra.mxu2 %v78_v38  ;;  %v203_v39 = vpop.f32.mrf.mxu0 }
  0xc0   :  { %v204_v40 = vadd.f32 %v203_v39, %v1376_v18  ;;  %v412_v41 = vpop.f32.mrf.mxu1 }
  0xc1   :  { %v413_v42 = vadd.f32 %v412_v41, %v1378_v19 }
  0xc2   :  { %813 = vst [vmem:[#allocation8 + $0x30] sm:$0xff] %v204_v40  ;;  %v347_v43 = vpop.f32.mrf.mxu3  ;;  %v621_v44 = vpop.f32.mrf.mxu2  ;;  %250 = vmatmul.f32.gmra.mxu0 %v78_v38 }
  0xc3   :  { %v348_v45 = vadd.f32 %v347_v43, %v1376_v18  ;;  %814 = vst [vmem:[#allocation8 + $0x38] sm:$0xff] %v413_v42  ;;  %v622_v47 = vadd.f32 %v621_v44, %v1381_v21  ;;  %459 = vmatmul.f32.gmra.mxu1 %v78_v38  ;;  %v83_v38 = vld [vmem:[#allocation2 + $0xb8] sm:$0xff] }
  0xc5   :  { %957 = vst [vmem:[#allocation8 + $0x4b0] sm:$0xff] %v348_v45 }
  0xc6   :  { %815 = vst [vmem:[#allocation8 + $0x40] sm:$0xff] %v622_v47 }
  0xc7   :  { %558 = vmatmul.f32.gmra.mxu3 %v1319_v54  ;;  %671 = vmatmul.f32.gmra.mxu2 %v79_v48  ;;  %v206_v49 = vpop.f32.mrf.mxu0 }
  0xc8   :  { %v207_v51 = vadd.f32 %v206_v49, %v1376_v18  ;;  %v415_v53 = vpop.f32.mrf.mxu1 }
  0xc9   :  { %v416_v55 = vadd.f32 %v415_v53, %v1378_v19 }
  0xca   :  { %816 = vst [vmem:[#allocation8 + $0x48] sm:$0xff] %v207_v51  ;;  %v350_v57 = vpop.f32.mrf.mxu3  ;;  %v624_v59 = vpop.f32.mrf.mxu2  ;;  %253 = vmatmul.f32.gmra.mxu0 %v79_v48 }
  0xcb   :  { %v351_v61 = vadd.f32 %v350_v57, %v1376_v18  ;;  %817 = vst [vmem:[#allocation8 + $0x50] sm:$0xff] %v416_v55  ;;  %v625_v63 = vadd.f32 %v624_v59, %v1381_v21  ;;  %462 = vmatmul.f32.gmra.mxu1 %v79_v48  ;;  %v84_v48 = vld [vmem:[#allocation2 + $0xc0] sm:$0xff] }
  0xcd   :  { %960 = vst [vmem:[#allocation8 + $0x4c8] sm:$0xff] %v351_v61 }
  0xce   :  { %818 = vst [vmem:[#allocation8 + $0x58] sm:$0xff] %v625_v63 }
  0xcf   :  { %561 = vmatmul.f32.gmra.mxu3 %v1324_v56  ;;  %674 = vmatmul.f32.gmra.mxu2 %v80_v1  ;;  %v209_v3 = vpop.f32.mrf.mxu0 }
  0xd0   :  { %v210_v5 = vadd.f32 %v209_v3, %v1376_v18  ;;  %v418_v7 = vpop.f32.mrf.mxu1 }
  0xd1   :  { %v419_v9 = vadd.f32 %v418_v7, %v1378_v19 }
  0xd2   :  { %819 = vst [vmem:[#allocation8 + $0x60] sm:$0xff] %v210_v5  ;;  %v353_v11 = vpop.f32.mrf.mxu3  ;;  %v627_v13 = vpop.f32.mrf.mxu2  ;;  %256 = vmatmul.f32.gmra.mxu0 %v80_v1 }
  0xd3   :  { %v354_v15 = vadd.f32 %v353_v11, %v1376_v18  ;;  %820 = vst [vmem:[#allocation8 + $0x68] sm:$0xff] %v419_v9  ;;  %v628_v16 = vadd.f32 %v627_v13, %v1381_v21  ;;  %465 = vmatmul.f32.gmra.mxu1 %v80_v1  ;;  %v85_v1 = vld [vmem:[#allocation2 + $0xc8] sm:$0xff] }
  0xd5   :  { %963 = vst [vmem:[#allocation8 + $0x4e0] sm:$0xff] %v354_v15 }
  0xd6   :  { %821 = vst [vmem:[#allocation8 + $0x70] sm:$0xff] %v628_v16 }
  0xd7   :  { %564 = vmatmul.f32.gmra.mxu3 %v1329_v58  ;;  %677 = vmatmul.f32.gmra.mxu2 %v81_v17  ;;  %v212_v20 = vpop.f32.mrf.mxu0 }
  0xd8   :  { %v213_v22 = vadd.f32 %v212_v20, %v1376_v18  ;;  %v421_v23 = vpop.f32.mrf.mxu1 }
  0xd9   :  { %v422_v24 = vadd.f32 %v421_v23, %v1378_v19 }
  0xda   :  { %822 = vst [vmem:[#allocation8 + $0x78] sm:$0xff] %v213_v22  ;;  %v356_v25 = vpop.f32.mrf.mxu3  ;;  %v630_v26 = vpop.f32.mrf.mxu2  ;;  %259 = vmatmul.f32.gmra.mxu0 %v81_v17 }
  0xdb   :  { %v357_v27 = vadd.f32 %v356_v25, %v1376_v18  ;;  %823 = vst [vmem:[#allocation8 + $0x80] sm:$0xff] %v422_v24  ;;  %v631_v28 = vadd.f32 %v630_v26, %v1381_v21  ;;  %468 = vmatmul.f32.gmra.mxu1 %v81_v17  ;;  %v86_v17 = vld [vmem:[#allocation2 + $0xd0] sm:$0xff] }
  0xdd   :  { %966 = vst [vmem:[#allocation8 + $0x4f8] sm:$0xff] %v357_v27 }
  0xde   :  { %824 = vst [vmem:[#allocation8 + $0x88] sm:$0xff] %v631_v28 }
  0xdf   :  { %567 = vmatmul.f32.gmra.mxu3 %v1335_v60  ;;  %680 = vmatmul.f32.gmra.mxu2 %v82_v29  ;;  %v215_v30 = vpop.f32.mrf.mxu0 }
  0xe0   :  { %v216_v31 = vadd.f32 %v215_v30, %v1376_v18  ;;  %v424_v32 = vpop.f32.mrf.mxu1 }
  0xe1   :  { %v425_v33 = vadd.f32 %v424_v32, %v1378_v19 }
  0xe2   :  { %825 = vst [vmem:[#allocation8 + $0x90] sm:$0xff] %v216_v31  ;;  %v359_v34 = vpop.f32.mrf.mxu3  ;;  %v633_v35 = vpop.f32.mrf.mxu2  ;;  %262 = vmatmul.f32.gmra.mxu0 %v82_v29 }
  0xe3   :  { %v360_v36 = vadd.f32 %v359_v34, %v1376_v18  ;;  %826 = vst [vmem:[#allocation8 + $0x98] sm:$0xff] %v425_v33  ;;  %v634_v37 = vadd.f32 %v633_v35, %v1381_v21  ;;  %471 = vmatmul.f32.gmra.mxu1 %v82_v29  ;;  %v87_v29 = vld [vmem:[#allocation2 + $0xd8] sm:$0xff] }
  0xe5   :  { %969 = vst [vmem:[#allocation8 + $0x510] sm:$0xff] %v360_v36 }
  0xe6   :  { %827 = vst [vmem:[#allocation8 + $0xa0] sm:$0xff] %v634_v37 }
  0xe7   :  { %570 = vmatmul.f32.gmra.mxu3 %v1342_v62  ;;  %683 = vmatmul.f32.gmra.mxu2 %v83_v38  ;;  %v218_v39 = vpop.f32.mrf.mxu0 }
  0xe8   :  { %v219_v40 = vadd.f32 %v218_v39, %v1376_v18  ;;  %v427_v41 = vpop.f32.mrf.mxu1 }
  0xe9   :  { %v428_v42 = vadd.f32 %v427_v41, %v1378_v19 }
  0xea   :  { %828 = vst [vmem:[#allocation8 + $0xa8] sm:$0xff] %v219_v40  ;;  %v362_v43 = vpop.f32.mrf.mxu3  ;;  %v636_v44 = vpop.f32.mrf.mxu2  ;;  %265 = vmatmul.f32.gmra.mxu0 %v83_v38 }
  0xeb   :  { %v363_v45 = vadd.f32 %v362_v43, %v1376_v18  ;;  %829 = vst [vmem:[#allocation8 + $0xb0] sm:$0xff] %v428_v42  ;;  %v637_v47 = vadd.f32 %v636_v44, %v1381_v21  ;;  %474 = vmatmul.f32.gmra.mxu1 %v83_v38  ;;  %v88_v38 = vld [vmem:[#allocation2 + $0xe0] sm:$0xff] }
  0xed   :  { %972 = vst [vmem:[#allocation8 + $0x528] sm:$0xff] %v363_v45 }
  0xee   :  { %830 = vst [vmem:[#allocation8 + $0xb8] sm:$0xff] %v637_v47 }
  0xef   :  { %573 = vmatmul.f32.gmra.mxu3 %v1349_v0  ;;  %686 = vmatmul.f32.gmra.mxu2 %v84_v48  ;;  %v221_v49 = vpop.f32.mrf.mxu0 }
  0xf0   :  { %v222_v51 = vadd.f32 %v221_v49, %v1376_v18  ;;  %v430_v53 = vpop.f32.mrf.mxu1 }
  0xf1   :  { %v431_v55 = vadd.f32 %v430_v53, %v1378_v19 }
  0xf2   :  { %831 = vst [vmem:[#allocation8 + $0xc0] sm:$0xff] %v222_v51  ;;  %v365_v57 = vpop.f32.mrf.mxu3  ;;  %v639_v59 = vpop.f32.mrf.mxu2  ;;  %268 = vmatmul.f32.gmra.mxu0 %v84_v48 }
  0xf3   :  { %v366_v61 = vadd.f32 %v365_v57, %v1376_v18  ;;  %832 = vst [vmem:[#allocation8 + $0xc8] sm:$0xff] %v431_v55  ;;  %v640_v63 = vadd.f32 %v639_v59, %v1381_v21  ;;  %477 = vmatmul.f32.gmra.mxu1 %v84_v48  ;;  %v89_v48 = vld [vmem:[#allocation2 + $0xe8] sm:$0xff] }
  0xf5   :  { %975 = vst [vmem:[#allocation8 + $0x540] sm:$0xff] %v366_v61 }
  0xf6   :  { %833 = vst [vmem:[#allocation8 + $0xd0] sm:$0xff] %v640_v63 }
  0xf7   :  { %576 = vmatmul.f32.gmra.mxu3 %v1355_v2  ;;  %689 = vmatmul.f32.gmra.mxu2 %v85_v1  ;;  %v224_v3 = vpop.f32.mrf.mxu0 }
  0xf8   :  { %v225_v5 = vadd.f32 %v224_v3, %v1376_v18  ;;  %v433_v7 = vpop.f32.mrf.mxu1 }
  0xf9   :  { %v434_v9 = vadd.f32 %v433_v7, %v1378_v19 }
  0xfa   :  { %834 = vst [vmem:[#allocation8 + $0xd8] sm:$0xff] %v225_v5  ;;  %v368_v11 = vpop.f32.mrf.mxu3  ;;  %v642_v13 = vpop.f32.mrf.mxu2  ;;  %271 = vmatmul.f32.gmra.mxu0 %v85_v1 }
  0xfb   :  { %v369_v15 = vadd.f32 %v368_v11, %v1376_v18  ;;  %835 = vst [vmem:[#allocation8 + $0xe0] sm:$0xff] %v434_v9  ;;  %v643_v16 = vadd.f32 %v642_v13, %v1381_v21  ;;  %480 = vmatmul.f32.gmra.mxu1 %v85_v1  ;;  %v90_v1 = vld [vmem:[#allocation2 + $0xf0] sm:$0xff] }
  0xfd   :  { %978 = vst [vmem:[#allocation8 + $0x558] sm:$0xff] %v369_v15 }
  0xfe   :  { %836 = vst [vmem:[#allocation8 + $0xe8] sm:$0xff] %v643_v16  ;;  %v91_v16 = vld [vmem:[#allocation2 + $0xf8] sm:$0xff] }
  0xff   :  { %579 = vmatmul.f32.gmra.mxu3 %v1358_v4  ;;  %692 = vmatmul.f32.gmra.mxu2 %v86_v17  ;;  %v227_v20 = vpop.f32.mrf.mxu0 }
 0x100   :  { %v228_v22 = vadd.f32 %v227_v20, %v1376_v18  ;;  %v436_v23 = vpop.f32.mrf.mxu1 }
 0x101   :  { %v437_v24 = vadd.f32 %v436_v23, %v1378_v19 }
 0x102   :  { %837 = vst [vmem:[#allocation8 + $0xf0] sm:$0xff] %v228_v22  ;;  %v371_v25 = vpop.f32.mrf.mxu3  ;;  %v645_v26 = vpop.f32.mrf.mxu2  ;;  %274 = vmatmul.f32.gmra.mxu0 %v86_v17 }
 0x103   :  { %v372_v27 = vadd.f32 %v371_v25, %v1376_v18  ;;  %838 = vst [vmem:[#allocation8 + $0xf8] sm:$0xff] %v437_v24  ;;  %v646_v28 = vadd.f32 %v645_v26, %v1381_v21  ;;  %483 = vmatmul.f32.gmra.mxu1 %v86_v17 }
 0x105   :  { %981 = vst [vmem:[#allocation8 + $0x570] sm:$0xff] %v372_v27  ;;  %v92_v27 = vld [vmem:[#allocation2 + $0x100] sm:$0xff] }
 0x106   :  { %839 = vst [vmem:[#allocation8 + $0x100] sm:$0xff] %v646_v28 }
 0x107   :  { %582 = vmatmul.f32.gmra.mxu3 %v1361_v6  ;;  %695 = vmatmul.f32.gmra.mxu2 %v87_v29  ;;  %v230_v30 = vpop.f32.mrf.mxu0 }
 0x108   :  { %v231_v31 = vadd.f32 %v230_v30, %v1376_v18  ;;  %v439_v32 = vpop.f32.mrf.mxu1 }
 0x109   :  { %v440_v33 = vadd.f32 %v439_v32, %v1378_v19 }
 0x10a   :  { %840 = vst [vmem:[#allocation8 + $0x108] sm:$0xff] %v231_v31  ;;  %v374_v34 = vpop.f32.mrf.mxu3  ;;  %v648_v35 = vpop.f32.mrf.mxu2  ;;  %277 = vmatmul.f32.gmra.mxu0 %v87_v29 }
 0x10b   :  { %v375_v36 = vadd.f32 %v374_v34, %v1376_v18  ;;  %841 = vst [vmem:[#allocation8 + $0x110] sm:$0xff] %v440_v33  ;;  %v649_v37 = vadd.f32 %v648_v35, %v1381_v21  ;;  %486 = vmatmul.f32.gmra.mxu1 %v87_v29  ;;  %v93_v35 = vld [vmem:[#allocation2 + $0x108] sm:$0xff] }
 0x10d   :  { %984 = vst [vmem:[#allocation8 + $0x588] sm:$0xff] %v375_v36 }
 0x10e   :  { %842 = vst [vmem:[#allocation8 + $0x118] sm:$0xff] %v649_v37 }
 0x10f   :  { %585 = vmatmul.f32.gmra.mxu3 %v1364_v8  ;;  %698 = vmatmul.f32.gmra.mxu2 %v88_v38  ;;  %v233_v39 = vpop.f32.mrf.mxu0 }
 0x110   :  { %v234_v40 = vadd.f32 %v233_v39, %v1376_v18  ;;  %v442_v41 = vpop.f32.mrf.mxu1 }
 0x111   :  { %v443_v42 = vadd.f32 %v442_v41, %v1378_v19 }
 0x112   :  { %843 = vst [vmem:[#allocation8 + $0x120] sm:$0xff] %v234_v40  ;;  %v377_v43 = vpop.f32.mrf.mxu3  ;;  %v651_v44 = vpop.f32.mrf.mxu2  ;;  %280 = vmatmul.f32.gmra.mxu0 %v88_v38 }
 0x113   :  { %v378_v45 = vadd.f32 %v377_v43, %v1376_v18  ;;  %844 = vst [vmem:[#allocation8 + $0x128] sm:$0xff] %v443_v42  ;;  %v652_v47 = vadd.f32 %v651_v44, %v1381_v21  ;;  %489 = vmatmul.f32.gmra.mxu1 %v88_v38  ;;  %v94_v43 = vld [vmem:[#allocation2 + $0x110] sm:$0xff] }
 0x115   :  { %987 = vst [vmem:[#allocation8 + $0x5a0] sm:$0xff] %v378_v45 }
 0x116   :  { %845 = vst [vmem:[#allocation8 + $0x130] sm:$0xff] %v652_v47 }
 0x117   :  { %588 = vmatmul.f32.gmra.mxu3 %v1367_v10  ;;  %701 = vmatmul.f32.gmra.mxu2 %v89_v48  ;;  %v236_v49 = vpop.f32.mrf.mxu0 }
 0x118   :  { %v237_v51 = vadd.f32 %v236_v49, %v1376_v18  ;;  %v445_v53 = vpop.f32.mrf.mxu1 }
 0x119   :  { %v446_v55 = vadd.f32 %v445_v53, %v1378_v19 }
 0x11a   :  { %846 = vst [vmem:[#allocation8 + $0x138] sm:$0xff] %v237_v51  ;;  %v380_v57 = vpop.f32.mrf.mxu3  ;;  %v654_v59 = vpop.f32.mrf.mxu2  ;;  %283 = vmatmul.f32.gmra.mxu0 %v89_v48 }
 0x11b   :  { %v381_v61 = vadd.f32 %v380_v57, %v1376_v18  ;;  %847 = vst [vmem:[#allocation8 + $0x140] sm:$0xff] %v446_v55  ;;  %v655_v63 = vadd.f32 %v654_v59, %v1381_v21  ;;  %492 = vmatmul.f32.gmra.mxu1 %v89_v48  ;;  %v95_v55 = vld [vmem:[#allocation2 + $0x118] sm:$0xff] }
 0x11d   :  { %990 = vst [vmem:[#allocation8 + $0x5b8] sm:$0xff] %v381_v61 }
 0x11e   :  { %848 = vst [vmem:[#allocation8 + $0x148] sm:$0xff] %v655_v63 }
 0x11f   :  { %591 = vmatmul.f32.gmra.mxu3 %v1370_v12  ;;  %704 = vmatmul.f32.gmra.mxu2 %v90_v1  ;;  %v239_v10 = vpop.f32.mrf.mxu0 }
 0x120   :  { %v240_v3 = vadd.f32 %v239_v10, %v1376_v18  ;;  %v448_v5 = vpop.f32.mrf.mxu1 }
 0x121   :  { %v449_v7 = vadd.f32 %v448_v5, %v1378_v19  ;;  %v96_v5 = vld [vmem:[#allocation2 + $0x120] sm:$0xff] }
 0x122   :  { %849 = vst [vmem:[#allocation8 + $0x150] sm:$0xff] %v240_v3  ;;  %v383_v9 = vpop.f32.mrf.mxu3  ;;  %v657_v11 = vpop.f32.mrf.mxu2  ;;  %286 = vmatmul.f32.gmra.mxu0 %v90_v1 }
 0x123   :  { %v384_v13 = vadd.f32 %v383_v9, %v1376_v18  ;;  %850 = vst [vmem:[#allocation8 + $0x158] sm:$0xff] %v449_v7  ;;  %v658_v15 = vadd.f32 %v657_v11, %v1381_v21  ;;  %495 = vmatmul.f32.gmra.mxu1 %v90_v1 }
 0x125   :  { %993 = vst [vmem:[#allocation8 + $0x5d0] sm:$0xff] %v384_v13 }
 0x126   :  { %851 = vst [vmem:[#allocation8 + $0x160] sm:$0xff] %v658_v15 }
 0x127   :  { %594 = vmatmul.f32.gmra.mxu3 %v1373_v14  ;;  %707 = vmatmul.f32.gmra.mxu2 %v91_v16  ;;  %v242_v12 = vpop.f32.mrf.mxu0 }
 0x128   :  { %v243_v17 = vadd.f32 %v242_v12, %v1376_v18  ;;  %v451_v20 = vpop.f32.mrf.mxu1 }
 0x129   :  { %v452_v22 = vadd.f32 %v451_v20, %v1378_v19 }
 0x12a   :  { %852 = vst [vmem:[#allocation8 + $0x168] sm:$0xff] %v243_v17  ;;  %v386_v23 = vpop.f32.mrf.mxu3  ;;  %v660_v24 = vpop.f32.mrf.mxu2  ;;  %289 = vmatmul.f32.gmra.mxu0 %v91_v16  ;;  %v97_v17 = vld [vmem:[#allocation2 + $0x128] sm:$0xff] }
 0x12b   :  { %v387_v25 = vadd.f32 %v386_v23, %v1376_v18  ;;  %853 = vst [vmem:[#allocation8 + $0x170] sm:$0xff] %v452_v22  ;;  %v661_v26 = vadd.f32 %v660_v24, %v1381_v21  ;;  %498 = vmatmul.f32.gmra.mxu1 %v91_v16 }
 0x12d   :  { %996 = vst [vmem:[#allocation8 + $0x5e8] sm:$0xff] %v387_v25 }
 0x12e   :  { %854 = vst [vmem:[#allocation8 + $0x178] sm:$0xff] %v661_v26 }
 0x12f   :  { %710 = vmatmul.f32.gmra.mxu2 %v92_v27  ;;  %758 = vmatmul.f32.vlgmr.msra.gmra.mxu3 %v1300_v46  ;;  %v245_v14 = vpop.f32.mrf.mxu0 }
 0x130   :  { %v246_v28 = vadd.f32 %v245_v14, %v1376_v18  ;;  %v454_v29 = vpop.f32.mrf.mxu1  ;;  %v98_v14 = vld [vmem:[#allocation2 + $0x130] sm:$0xff] }
 0x131   :  { %v455_v30 = vadd.f32 %v454_v29, %v1378_v19 }
 0x132   :  { %855 = vst [vmem:[#allocation8 + $0x180] sm:$0xff] %v246_v28  ;;  %v550_v31 = vpop.f32.mrf.mxu3  ;;  %v663_v32 = vpop.f32.mrf.mxu2  ;;  %292 = vmatmul.f32.gmra.mxu0 %v92_v27 }
 0x133   :  { %856 = vst [vmem:[#allocation8 + $0x188] sm:$0xff] %v455_v30  ;;  %v551_v33 = vadd.f32 %v550_v31, %v1378_v19  ;;  %v664_v34 = vadd.f32 %v663_v32, %v1381_v21  ;;  %501 = vmatmul.f32.gmra.mxu1 %v92_v27 }
 0x135   :  { %952 = vst [vmem:[#allocation8 + $0x488] sm:$0xff] %v551_v33 }
 0x136   :  { %857 = vst [vmem:[#allocation8 + $0x190] sm:$0xff] %v664_v34 }
 0x137   :  { %713 = vmatmul.f32.gmra.mxu2 %v93_v35  ;;  %761 = vmatmul.f32.gmra.mxu3 %v1306_v50  ;;  %v248_v46 = vpop.f32.mrf.mxu0 }
 0x138   :  { %v249_v36 = vadd.f32 %v248_v46, %v1376_v18  ;;  %v457_v37 = vpop.f32.mrf.mxu1 }
 0x139   :  { %v458_v38 = vadd.f32 %v457_v37, %v1378_v19 }
 0x13a   :  { %858 = vst [vmem:[#allocation8 + $0x198] sm:$0xff] %v249_v36  ;;  %v553_v39 = vpop.f32.mrf.mxu3  ;;  %v666_v40 = vpop.f32.mrf.mxu2  ;;  %295 = vmatmul.f32.gmra.mxu0 %v93_v35 }
 0x13b   :  { %859 = vst [vmem:[#allocation8 + $0x1a0] sm:$0xff] %v458_v38  ;;  %v554_v41 = vadd.f32 %v553_v39, %v1378_v19  ;;  %v667_v42 = vadd.f32 %v666_v40, %v1381_v21  ;;  %504 = vmatmul.f32.gmra.mxu1 %v93_v35  ;;  %v99_v35 = vld [vmem:[#allocation2 + $0x138] sm:$0xff] }
 0x13d   :  { %955 = vst [vmem:[#allocation8 + $0x4a0] sm:$0xff] %v554_v41 }
 0x13e   :  { %860 = vst [vmem:[#allocation8 + $0x1a8] sm:$0xff] %v667_v42  ;;  %v100_v42 = vld [vmem:[#allocation2 + $0x140] sm:$0xff] }
 0x13f   :  { %716 = vmatmul.f32.gmra.mxu2 %v94_v43  ;;  %764 = vmatmul.f32.gmra.mxu3 %v1312_v52  ;;  %v251_v50 = vpop.f32.mrf.mxu0 }
 0x140   :  { %v252_v44 = vadd.f32 %v251_v50, %v1376_v18  ;;  %v460_v45 = vpop.f32.mrf.mxu1 }
 0x141   :  { %v461_v47 = vadd.f32 %v460_v45, %v1378_v19 }
 0x142   :  { %861 = vst [vmem:[#allocation8 + $0x1b0] sm:$0xff] %v252_v44  ;;  %v556_v48 = vpop.f32.mrf.mxu3  ;;  %v669_v49 = vpop.f32.mrf.mxu2  ;;  %298 = vmatmul.f32.gmra.mxu0 %v94_v43 }
 0x143   :  { %862 = vst [vmem:[#allocation8 + $0x1b8] sm:$0xff] %v461_v47  ;;  %v557_v51 = vadd.f32 %v556_v48, %v1378_v19  ;;  %v670_v53 = vadd.f32 %v669_v49, %v1381_v21  ;;  %507 = vmatmul.f32.gmra.mxu1 %v94_v43 }
 0x145   :  { %958 = vst [vmem:[#allocation8 + $0x4b8] sm:$0xff] %v557_v51  ;;  %v101_v51 = vld [vmem:[#allocation2 + $0x148] sm:$0xff] }
 0x146   :  { %863 = vst [vmem:[#allocation8 + $0x1c0] sm:$0xff] %v670_v53 }
 0x147   :  { %719 = vmatmul.f32.gmra.mxu2 %v95_v55  ;;  %767 = vmatmul.f32.gmra.mxu3 %v1319_v54  ;;  %v254_v52 = vpop.f32.mrf.mxu0 }
 0x148   :  { %v255_v57 = vadd.f32 %v254_v52, %v1376_v18  ;;  %v463_v59 = vpop.f32.mrf.mxu1 }
 0x149   :  { %v464_v61 = vadd.f32 %v463_v59, %v1378_v19 }
 0x14a   :  { %864 = vst [vmem:[#allocation8 + $0x1c8] sm:$0xff] %v255_v57  ;;  %v559_v63 = vpop.f32.mrf.mxu3  ;;  %v672_v1 = vpop.f32.mrf.mxu2  ;;  %301 = vmatmul.f32.gmra.mxu0 %v95_v55 }
 0x14b   :  { %865 = vst [vmem:[#allocation8 + $0x1d0] sm:$0xff] %v464_v61  ;;  %v560_v10 = vadd.f32 %v559_v63, %v1378_v19  ;;  %v673_v3 = vadd.f32 %v672_v1, %v1381_v21  ;;  %510 = vmatmul.f32.gmra.mxu1 %v95_v55  ;;  %v102_v1 = vld [vmem:[#allocation2 + $0x150] sm:$0xff] }
 0x14d   :  { %961 = vst [vmem:[#allocation8 + $0x4d0] sm:$0xff] %v560_v10 }
 0x14e   :  { %866 = vst [vmem:[#allocation8 + $0x1d8] sm:$0xff] %v673_v3 }
 0x14f   :  { %722 = vmatmul.f32.gmra.mxu2 %v96_v5  ;;  %770 = vmatmul.f32.gmra.mxu3 %v1324_v56  ;;  %v257_v54 = vpop.f32.mrf.mxu0 }
 0x150   :  { %v258_v7 = vadd.f32 %v257_v54, %v1376_v18  ;;  %v466_v9 = vpop.f32.mrf.mxu1 }
 0x151   :  { %v467_v11 = vadd.f32 %v466_v9, %v1378_v19 }
 0x152   :  { %867 = vst [vmem:[#allocation8 + $0x1e0] sm:$0xff] %v258_v7  ;;  %v562_v13 = vpop.f32.mrf.mxu3  ;;  %v675_v15 = vpop.f32.mrf.mxu2  ;;  %304 = vmatmul.f32.gmra.mxu0 %v96_v5 }
 0x153   :  { %868 = vst [vmem:[#allocation8 + $0x1e8] sm:$0xff] %v467_v11  ;;  %v563_v16 = vadd.f32 %v562_v13, %v1378_v19  ;;  %v676_v12 = vadd.f32 %v675_v15, %v1381_v21  ;;  %513 = vmatmul.f32.gmra.mxu1 %v96_v5  ;;  %v103_v13 = vld [vmem:[#allocation2 + $0x158] sm:$0xff] }
 0x155   :  { %964 = vst [vmem:[#allocation8 + $0x4e8] sm:$0xff] %v563_v16 }
 0x156   :  { %869 = vst [vmem:[#allocation8 + $0x1f0] sm:$0xff] %v676_v12 }
 0x157   :  { %725 = vmatmul.f32.gmra.mxu2 %v97_v17  ;;  %773 = vmatmul.f32.gmra.mxu3 %v1329_v58  ;;  %v260_v56 = vpop.f32.mrf.mxu0 }
 0x158   :  { %v261_v20 = vadd.f32 %v260_v56, %v1376_v18  ;;  %v469_v22 = vpop.f32.mrf.mxu1 }
 0x159   :  { %v470_v23 = vadd.f32 %v469_v22, %v1378_v19 }
 0x15a   :  { %870 = vst [vmem:[#allocation8 + $0x1f8] sm:$0xff] %v261_v20  ;;  %v565_v24 = vpop.f32.mrf.mxu3  ;;  %v678_v25 = vpop.f32.mrf.mxu2  ;;  %307 = vmatmul.f32.gmra.mxu0 %v97_v17 }
 0x15b   :  { %871 = vst [vmem:[#allocation8 + $0x200] sm:$0xff] %v470_v23  ;;  %v566_v26 = vadd.f32 %v565_v24, %v1378_v19  ;;  %v679_v27 = vadd.f32 %v678_v25, %v1381_v21  ;;  %516 = vmatmul.f32.gmra.mxu1 %v97_v17  ;;  %v104_v23 = vld [vmem:[#allocation2 + $0x160] sm:$0xff] }
 0x15d   :  { %967 = vst [vmem:[#allocation8 + $0x500] sm:$0xff] %v566_v26 }
 0x15e   :  { %872 = vst [vmem:[#allocation8 + $0x208] sm:$0xff] %v679_v27 }
 0x15f   :  { %728 = vmatmul.f32.gmra.mxu2 %v98_v14  ;;  %776 = vmatmul.f32.gmra.mxu3 %v1335_v60  ;;  %v263_v58 = vpop.f32.mrf.mxu0 }
 0x160   :  { %v264_v28 = vadd.f32 %v263_v58, %v1376_v18  ;;  %v472_v29 = vpop.f32.mrf.mxu1 }
 0x161   :  { %v473_v30 = vadd.f32 %v472_v29, %v1378_v19  ;;  %v105_v29 = vld [vmem:[#allocation2 + $0x168] sm:$0xff] }
 0x162   :  { %873 = vst [vmem:[#allocation8 + $0x210] sm:$0xff] %v264_v28  ;;  %v568_v31 = vpop.f32.mrf.mxu3  ;;  %v681_v32 = vpop.f32.mrf.mxu2  ;;  %310 = vmatmul.f32.gmra.mxu0 %v98_v14 }
 0x163   :  { %874 = vst [vmem:[#allocation8 + $0x218] sm:$0xff] %v473_v30  ;;  %v569_v33 = vadd.f32 %v568_v31, %v1378_v19  ;;  %v682_v34 = vadd.f32 %v681_v32, %v1381_v21  ;;  %519 = vmatmul.f32.gmra.mxu1 %v98_v14 }
 0x165   :  { %970 = vst [vmem:[#allocation8 + $0x518] sm:$0xff] %v569_v33 }
 0x166   :  { %875 = vst [vmem:[#allocation8 + $0x220] sm:$0xff] %v682_v34 }
 0x167   :  { %731 = vmatmul.f32.gmra.mxu2 %v99_v35  ;;  %779 = vmatmul.f32.gmra.mxu3 %v1342_v62  ;;  %v266_v60 = vpop.f32.mrf.mxu0 }
 0x168   :  { %v267_v46 = vadd.f32 %v266_v60, %v1376_v18  ;;  %v475_v36 = vpop.f32.mrf.mxu1 }
 0x169   :  { %v476_v37 = vadd.f32 %v475_v36, %v1378_v19  ;;  %v106_v36 = vld [vmem:[#allocation2 + $0x170] sm:$0xff] }
 0x16a   :  { %876 = vst [vmem:[#allocation8 + $0x228] sm:$0xff] %v267_v46  ;;  %v571_v38 = vpop.f32.mrf.mxu3  ;;  %v684_v39 = vpop.f32.mrf.mxu2  ;;  %313 = vmatmul.f32.gmra.mxu0 %v99_v35 }
 0x16b   :  { %877 = vst [vmem:[#allocation8 + $0x230] sm:$0xff] %v476_v37  ;;  %v572_v40 = vadd.f32 %v571_v38, %v1378_v19  ;;  %v685_v41 = vadd.f32 %v684_v39, %v1381_v21  ;;  %522 = vmatmul.f32.gmra.mxu1 %v99_v35  ;;  %v1076_v37 = vld [vmem:[#allocation2 + $0x1f0] sm:$0xff] }
 0x16d   :  { %973 = vst [vmem:[#allocation8 + $0x530] sm:$0xff] %v572_v40 }
 0x16e   :  { %878 = vst [vmem:[#allocation8 + $0x238] sm:$0xff] %v685_v41 }
 0x16f   :  { %734 = vmatmul.f32.gmra.mxu2 %v100_v42  ;;  %782 = vmatmul.f32.gmra.mxu3 %v1349_v0  ;;  %v269_v62 = vpop.f32.mrf.mxu0 }
 0x170   :  { %v270_v43 = vadd.f32 %v269_v62, %v1376_v18  ;;  %v478_v50 = vpop.f32.mrf.mxu1 }
 0x171   :  { %v479_v44 = vadd.f32 %v478_v50, %v1378_v19 }
 0x172   :  { %879 = vst [vmem:[#allocation8 + $0x240] sm:$0xff] %v270_v43  ;;  %v574_v45 = vpop.f32.mrf.mxu3  ;;  %v687_v47 = vpop.f32.mrf.mxu2  ;;  %316 = vmatmul.f32.gmra.mxu0 %v100_v42 }
 0x173   :  { %880 = vst [vmem:[#allocation8 + $0x248] sm:$0xff] %v479_v44  ;;  %v575_v48 = vadd.f32 %v574_v45, %v1378_v19  ;;  %v688_v49 = vadd.f32 %v687_v47, %v1381_v21  ;;  %525 = vmatmul.f32.gmra.mxu1 %v100_v42  ;;  %v107_v44 = vld [vmem:[#allocation2 + $0x178] sm:$0xff] }
 0x174   :  { %v1077_v45 = vld [vmem:[#allocation2 + $0x1f8] sm:$0xff] }
 0x175   :  { %976 = vst [vmem:[#allocation8 + $0x548] sm:$0xff] %v575_v48 }
 0x176   :  { %881 = vst [vmem:[#allocation8 + $0x250] sm:$0xff] %v688_v49 }
 0x177   :  { %737 = vmatmul.f32.gmra.mxu2 %v101_v51  ;;  %785 = vmatmul.f32.gmra.mxu3 %v1355_v2  ;;  %v272_v0 = vpop.f32.mrf.mxu0 }
 0x178   :  { %v273_v53 = vadd.f32 %v272_v0, %v1376_v18  ;;  %v481_v55 = vpop.f32.mrf.mxu1 }
 0x179   :  { %v482_v52 = vadd.f32 %v481_v55, %v1378_v19 }
 0x17a   :  { %882 = vst [vmem:[#allocation8 + $0x258] sm:$0xff] %v273_v53  ;;  %v577_v57 = vpop.f32.mrf.mxu3  ;;  %v690_v59 = vpop.f32.mrf.mxu2  ;;  %319 = vmatmul.f32.gmra.mxu0 %v101_v51 }
 0x17b   :  { %883 = vst [vmem:[#allocation8 + $0x260] sm:$0xff] %v482_v52  ;;  %v578_v61 = vadd.f32 %v577_v57, %v1378_v19  ;;  %v691_v63 = vadd.f32 %v690_v59, %v1381_v21  ;;  %528 = vmatmul.f32.gmra.mxu1 %v101_v51 }
 0x17d   :  { %979 = vst [vmem:[#allocation8 + $0x560] sm:$0xff] %v578_v61 }
 0x17e   :  { %884 = vst [vmem:[#allocation8 + $0x268] sm:$0xff] %v691_v63 }
 0x17f   :  { %740 = vmatmul.f32.gmra.mxu2 %v102_v1  ;;  %788 = vmatmul.f32.gmra.mxu3 %v1358_v4  ;;  %v275_v2 = vpop.f32.mrf.mxu0 }
 0x180   :  { %v276_v10 = vadd.f32 %v275_v2, %v1376_v18  ;;  %v484_v3 = vpop.f32.mrf.mxu1 }
 0x181   :  { %v485_v5 = vadd.f32 %v484_v3, %v1378_v19 }
 0x182   :  { %885 = vst [vmem:[#allocation8 + $0x270] sm:$0xff] %v276_v10  ;;  %v580_v54 = vpop.f32.mrf.mxu3  ;;  %v693_v7 = vpop.f32.mrf.mxu2  ;;  %322 = vmatmul.f32.gmra.mxu0 %v102_v1 }
 0x183   :  { %886 = vst [vmem:[#allocation8 + $0x278] sm:$0xff] %v485_v5  ;;  %v581_v9 = vadd.f32 %v580_v54, %v1378_v19  ;;  %v694_v11 = vadd.f32 %v693_v7, %v1381_v21  ;;  %531 = vmatmul.f32.gmra.mxu1 %v102_v1 }
 0x185   :  { %982 = vst [vmem:[#allocation8 + $0x578] sm:$0xff] %v581_v9 }
 0x186   :  { %887 = vst [vmem:[#allocation8 + $0x280] sm:$0xff] %v694_v11 }
 0x187   :  { %743 = vmatmul.f32.gmra.mxu2 %v103_v13  ;;  %791 = vmatmul.f32.gmra.mxu3 %v1361_v6  ;;  %v278_v4 = vpop.f32.mrf.mxu0 }
 0x188   :  { %v279_v15 = vadd.f32 %v278_v4, %v1376_v18  ;;  %v487_v16 = vpop.f32.mrf.mxu1 }
 0x189   :  { %v488_v12 = vadd.f32 %v487_v16, %v1378_v19 }
 0x18a   :  { %888 = vst [vmem:[#allocation8 + $0x288] sm:$0xff] %v279_v15  ;;  %v583_v17 = vpop.f32.mrf.mxu3  ;;  %v696_v56 = vpop.f32.mrf.mxu2  ;;  %325 = vmatmul.f32.gmra.mxu0 %v103_v13 }
 0x18b   :  { %889 = vst [vmem:[#allocation8 + $0x290] sm:$0xff] %v488_v12  ;;  %v584_v20 = vadd.f32 %v583_v17, %v1378_v19  ;;  %v697_v22 = vadd.f32 %v696_v56, %v1381_v21  ;;  %534 = vmatmul.f32.gmra.mxu1 %v103_v13 }
 0x18d   :  { %985 = vst [vmem:[#allocation8 + $0x590] sm:$0xff] %v584_v20 }
 0x18e   :  { %890 = vst [vmem:[#allocation8 + $0x298] sm:$0xff] %v697_v22 }
 0x18f   :  { %746 = vmatmul.f32.gmra.mxu2 %v104_v23  ;;  %794 = vmatmul.f32.gmra.mxu3 %v1364_v8  ;;  %v281_v6 = vpop.f32.mrf.mxu0  ;;  %v1075_v8 = vld [vmem:[#allocation2 + $0x1e8] sm:$0xff] }
 0x190   :  { %v282_v24 = vadd.f32 %v281_v6, %v1376_v18  ;;  %v490_v25 = vpop.f32.mrf.mxu1 }
 0x191   :  { %v491_v26 = vadd.f32 %v490_v25, %v1378_v19 }
 0x192   :  { %891 = vst [vmem:[#allocation8 + $0x2a0] sm:$0xff] %v282_v24  ;;  %v586_v27 = vpop.f32.mrf.mxu3  ;;  %v699_v14 = vpop.f32.mrf.mxu2  ;;  %328 = vmatmul.f32.gmra.mxu0 %v104_v23 }
 0x193   :  { %892 = vst [vmem:[#allocation8 + $0x2a8] sm:$0xff] %v491_v26  ;;  %v587_v58 = vadd.f32 %v586_v27, %v1378_v19  ;;  %v700_v28 = vadd.f32 %v699_v14, %v1381_v21  ;;  %537 = vmatmul.f32.gmra.mxu1 %v104_v23 }
 0x195   :  { %988 = vst [vmem:[#allocation8 + $0x5a8] sm:$0xff] %v587_v58 }
 0x196   :  { %893 = vst [vmem:[#allocation8 + $0x2b0] sm:$0xff] %v700_v28 }
 0x197   :  { %749 = vmatmul.f32.gmra.mxu2 %v105_v29  ;;  %797 = vmatmul.f32.gmra.mxu3 %v1075_v8  ;;  %v284_v30 = vpop.f32.mrf.mxu0 }
 0x198   :  { %v285_v31 = vadd.f32 %v284_v30, %v1376_v18  ;;  %v493_v32 = vpop.f32.mrf.mxu1 }
 0x199   :  { %v494_v33 = vadd.f32 %v493_v32, %v1378_v19 }
 0x19a   :  { %894 = vst [vmem:[#allocation8 + $0x2b8] sm:$0xff] %v285_v31  ;;  %v589_v34 = vpop.f32.mrf.mxu3  ;;  %v702_v35 = vpop.f32.mrf.mxu2  ;;  %331 = vmatmul.f32.gmra.mxu0 %v105_v29 }
 0x19b   :  { %895 = vst [vmem:[#allocation8 + $0x2c0] sm:$0xff] %v494_v33  ;;  %v590_v60 = vadd.f32 %v589_v34, %v1378_v19  ;;  %v703_v46 = vadd.f32 %v702_v35, %v1381_v21  ;;  %540 = vmatmul.f32.gmra.mxu1 %v105_v29 }
 0x19d   :  { %991 = vst [vmem:[#allocation8 + $0x5c0] sm:$0xff] %v590_v60 }
 0x19e   :  { %896 = vst [vmem:[#allocation8 + $0x2c8] sm:$0xff] %v703_v46 }
 0x19f   :  { %752 = vmatmul.f32.gmra.mxu2 %v106_v36  ;;  %800 = vmatmul.f32.gmra.mxu3 %v1076_v37  ;;  %v287_v38 = vpop.f32.mrf.mxu0 }
 0x1a0   :  { %v288_v39 = vadd.f32 %v287_v38, %v1376_v18  ;;  %v496_v40 = vpop.f32.mrf.mxu1 }
 0x1a1   :  { %v497_v41 = vadd.f32 %v496_v40, %v1378_v19 }
 0x1a2   :  { %897 = vst [vmem:[#allocation8 + $0x2d0] sm:$0xff] %v288_v39  ;;  %v592_v42 = vpop.f32.mrf.mxu3  ;;  %v705_v62 = vpop.f32.mrf.mxu2  ;;  %334 = vmatmul.f32.gmra.mxu0 %v106_v36 }
 0x1a3   :  { %898 = vst [vmem:[#allocation8 + $0x2d8] sm:$0xff] %v497_v41  ;;  %v593_v43 = vadd.f32 %v592_v42, %v1378_v19  ;;  %v706_v50 = vadd.f32 %v705_v62, %v1381_v21  ;;  %543 = vmatmul.f32.gmra.mxu1 %v106_v36 }
 0x1a5   :  { %994 = vst [vmem:[#allocation8 + $0x5d8] sm:$0xff] %v593_v43 }
 0x1a6   :  { %899 = vst [vmem:[#allocation8 + $0x2e0] sm:$0xff] %v706_v50 }
 0x1a7   :  { %755 = vmatmul.f32.gmra.mxu2 %v107_v44  ;;  %803 = vmatmul.f32.gmra.mxu3 %v1077_v45  ;;  %v290_v47 = vpop.f32.mrf.mxu0 }
 0x1a8   :  { %v291_v48 = vadd.f32 %v290_v47, %v1376_v18  ;;  %v499_v49 = vpop.f32.mrf.mxu1 }
 0x1a9   :  { %v500_v51 = vadd.f32 %v499_v49, %v1378_v19 }
 0x1aa   :  { %900 = vst [vmem:[#allocation8 + $0x2e8] sm:$0xff] %v291_v48  ;;  %v595_v0 = vpop.f32.mrf.mxu3  ;;  %v708_v53 = vpop.f32.mrf.mxu2  ;;  %337 = vmatmul.f32.gmra.mxu0 %v107_v44 }
 0x1ab   :  { %901 = vst [vmem:[#allocation8 + $0x2f0] sm:$0xff] %v500_v51  ;;  %v596_v55 = vadd.f32 %v595_v0, %v1378_v19  ;;  %v709_v52 = vadd.f32 %v708_v53, %v1381_v21  ;;  %546 = vmatmul.f32.gmra.mxu1 %v107_v44 }
 0x1ad   :  { %997 = vst [vmem:[#allocation8 + $0x5f0] sm:$0xff] %v596_v55 }
 0x1ae   :  { %902 = vst [vmem:[#allocation8 + $0x2f8] sm:$0xff] %v709_v52 }
 0x1af   :  { %v293_v57 = vpop.f32.mrf.mxu0 }
 0x1b0   :  { %v294_v59 = vadd.f32 %v293_v57, %v1376_v18  ;;  %v502_v61 = vpop.f32.mrf.mxu1 }
 0x1b1   :  { %v503_v63 = vadd.f32 %v502_v61, %v1378_v19 }
 0x1b2   :  { %903 = vst [vmem:[#allocation8 + $0x300] sm:$0xff] %v294_v59  ;;  %v711_v1 = vpop.f32.mrf.mxu2  ;;  %v759_v2 = vpop.f32.mrf.mxu3 }
 0x1b3   :  { %904 = vst [vmem:[#allocation8 + $0x308] sm:$0xff] %v503_v63  ;;  %v712_v10 = vadd.f32 %v711_v1, %v1381_v21  ;;  %v760_v3 = vadd.f32 %v759_v2, %v1381_v21 }
 0x1b5   :  { %905 = vst [vmem:[#allocation8 + $0x310] sm:$0xff] %v712_v10 }
 0x1b6   :  { %953 = vst [vmem:[#allocation8 + $0x490] sm:$0xff] %v760_v3 }
 0x1b7   :  { %v296_v5 = vpop.f32.mrf.mxu0 }
 0x1b8   :  { %v297_v54 = vadd.f32 %v296_v5, %v1376_v18  ;;  %v505_v7 = vpop.f32.mrf.mxu1 }
 0x1b9   :  { %v506_v9 = vadd.f32 %v505_v7, %v1378_v19 }
 0x1ba   :  { %906 = vst [vmem:[#allocation8 + $0x318] sm:$0xff] %v297_v54  ;;  %v714_v11 = vpop.f32.mrf.mxu2  ;;  %v762_v13 = vpop.f32.mrf.mxu3 }
 0x1bb   :  { %907 = vst [vmem:[#allocation8 + $0x320] sm:$0xff] %v506_v9  ;;  %v715_v4 = vadd.f32 %v714_v11, %v1381_v21  ;;  %v763_v15 = vadd.f32 %v762_v13, %v1381_v21 }
 0x1bd   :  { %908 = vst [vmem:[#allocation8 + $0x328] sm:$0xff] %v715_v4 }
 0x1be   :  { %956 = vst [vmem:[#allocation8 + $0x4a8] sm:$0xff] %v763_v15 }
 0x1bf   :  { %v299_v16 = vpop.f32.mrf.mxu0 }
 0x1c0   :  { %v300_v12 = vadd.f32 %v299_v16, %v1376_v18  ;;  %v508_v17 = vpop.f32.mrf.mxu1 }
 0x1c1   :  { %v509_v56 = vadd.f32 %v508_v17, %v1378_v19 }
 0x1c2   :  { %909 = vst [vmem:[#allocation8 + $0x330] sm:$0xff] %v300_v12  ;;  %v717_v20 = vpop.f32.mrf.mxu2  ;;  %v765_v22 = vpop.f32.mrf.mxu3 }
 0x1c3   :  { %910 = vst [vmem:[#allocation8 + $0x338] sm:$0xff] %v509_v56  ;;  %v718_v23 = vadd.f32 %v717_v20, %v1381_v21  ;;  %v766_v6 = vadd.f32 %v765_v22, %v1381_v21 }
 0x1c5   :  { %911 = vst [vmem:[#allocation8 + $0x340] sm:$0xff] %v718_v23 }
 0x1c6   :  { %959 = vst [vmem:[#allocation8 + $0x4c0] sm:$0xff] %v766_v6 }
 0x1c7   :  { %v302_v24 = vpop.f32.mrf.mxu0 }
 0x1c8   :  { %v303_v25 = vadd.f32 %v302_v24, %v1376_v18  ;;  %v511_v26 = vpop.f32.mrf.mxu1 }
 0x1c9   :  { %v512_v27 = vadd.f32 %v511_v26, %v1378_v19 }
 0x1ca   :  { %912 = vst [vmem:[#allocation8 + $0x348] sm:$0xff] %v303_v25  ;;  %v720_v14 = vpop.f32.mrf.mxu2  ;;  %v768_v58 = vpop.f32.mrf.mxu3 }
 0x1cb   :  { %913 = vst [vmem:[#allocation8 + $0x350] sm:$0xff] %v512_v27  ;;  %v721_v28 = vadd.f32 %v720_v14, %v1381_v21  ;;  %v769_v29 = vadd.f32 %v768_v58, %v1381_v21 }
 0x1cd   :  { %914 = vst [vmem:[#allocation8 + $0x358] sm:$0xff] %v721_v28 }
 0x1ce   :  { %962 = vst [vmem:[#allocation8 + $0x4d8] sm:$0xff] %v769_v29 }
 0x1cf   :  { %v305_v8 = vpop.f32.mrf.mxu0 }
 0x1d0   :  { %v306_v30 = vadd.f32 %v305_v8, %v1376_v18  ;;  %v514_v31 = vpop.f32.mrf.mxu1 }
 0x1d1   :  { %v515_v32 = vadd.f32 %v514_v31, %v1378_v19 }
 0x1d2   :  { %915 = vst [vmem:[#allocation8 + $0x360] sm:$0xff] %v306_v30  ;;  %v723_v33 = vpop.f32.mrf.mxu2  ;;  %v771_v34 = vpop.f32.mrf.mxu3 }
 0x1d3   :  { %916 = vst [vmem:[#allocation8 + $0x368] sm:$0xff] %v515_v32  ;;  %v724_v35 = vadd.f32 %v723_v33, %v1381_v21  ;;  %v772_v60 = vadd.f32 %v771_v34, %v1381_v21 }
 0x1d5   :  { %917 = vst [vmem:[#allocation8 + $0x370] sm:$0xff] %v724_v35 }
 0x1d6   :  { %965 = vst [vmem:[#allocation8 + $0x4f0] sm:$0xff] %v772_v60 }
 0x1d7   :  { %v308_v46 = vpop.f32.mrf.mxu0 }
 0x1d8   :  { %v309_v36 = vadd.f32 %v308_v46, %v1376_v18  ;;  %v517_v37 = vpop.f32.mrf.mxu1 }
 0x1d9   :  { %v518_v38 = vadd.f32 %v517_v37, %v1378_v19 }
 0x1da   :  { %918 = vst [vmem:[#allocation8 + $0x378] sm:$0xff] %v309_v36  ;;  %v726_v39 = vpop.f32.mrf.mxu2  ;;  %v774_v40 = vpop.f32.mrf.mxu3 }
 0x1db   :  { %919 = vst [vmem:[#allocation8 + $0x380] sm:$0xff] %v518_v38  ;;  %v727_v41 = vadd.f32 %v726_v39, %v1381_v21  ;;  %v775_v42 = vadd.f32 %v774_v40, %v1381_v21 }
 0x1dd   :  { %920 = vst [vmem:[#allocation8 + $0x388] sm:$0xff] %v727_v41 }
 0x1de   :  { %968 = vst [vmem:[#allocation8 + $0x508] sm:$0xff] %v775_v42 }
 0x1df   :  { %v311_v62 = vpop.f32.mrf.mxu0 }
 0x1e0   :  { %v312_v43 = vadd.f32 %v311_v62, %v1376_v18  ;;  %v520_v50 = vpop.f32.mrf.mxu1 }
 0x1e1   :  { %v521_v44 = vadd.f32 %v520_v50, %v1378_v19 }
 0x1e2   :  { %921 = vst [vmem:[#allocation8 + $0x390] sm:$0xff] %v312_v43  ;;  %v729_v45 = vpop.f32.mrf.mxu2  ;;  %v777_v47 = vpop.f32.mrf.mxu3 }
 0x1e3   :  { %922 = vst [vmem:[#allocation8 + $0x398] sm:$0xff] %v521_v44  ;;  %v730_v48 = vadd.f32 %v729_v45, %v1381_v21  ;;  %v778_v49 = vadd.f32 %v777_v47, %v1381_v21 }
 0x1e5   :  { %923 = vst [vmem:[#allocation8 + $0x3a0] sm:$0xff] %v730_v48 }
 0x1e6   :  { %971 = vst [vmem:[#allocation8 + $0x520] sm:$0xff] %v778_v49 }
 0x1e7   :  { %v314_v51 = vpop.f32.mrf.mxu0 }
 0x1e8   :  { %v315_v0 = vadd.f32 %v314_v51, %v1376_v18  ;;  %v523_v53 = vpop.f32.mrf.mxu1 }
 0x1e9   :  { %v524_v55 = vadd.f32 %v523_v53, %v1378_v19 }
 0x1ea   :  { %924 = vst [vmem:[#allocation8 + $0x3a8] sm:$0xff] %v315_v0  ;;  %v732_v52 = vpop.f32.mrf.mxu2  ;;  %v780_v57 = vpop.f32.mrf.mxu3 }
 0x1eb   :  { %925 = vst [vmem:[#allocation8 + $0x3b0] sm:$0xff] %v524_v55  ;;  %v733_v59 = vadd.f32 %v732_v52, %v1381_v21  ;;  %v781_v61 = vadd.f32 %v780_v57, %v1381_v21 }
 0x1ed   :  { %926 = vst [vmem:[#allocation8 + $0x3b8] sm:$0xff] %v733_v59 }
 0x1ee   :  { %974 = vst [vmem:[#allocation8 + $0x538] sm:$0xff] %v781_v61 }
 0x1ef   :  { %v317_v63 = vpop.f32.mrf.mxu0 }
 0x1f0   :  { %v318_v1 = vadd.f32 %v317_v63, %v1376_v18  ;;  %v526_v2 = vpop.f32.mrf.mxu1 }
 0x1f1   :  { %v527_v10 = vadd.f32 %v526_v2, %v1378_v19 }
 0x1f2   :  { %927 = vst [vmem:[#allocation8 + $0x3c0] sm:$0xff] %v318_v1  ;;  %v735_v3 = vpop.f32.mrf.mxu2  ;;  %v783_v5 = vpop.f32.mrf.mxu3 }
 0x1f3   :  { %928 = vst [vmem:[#allocation8 + $0x3c8] sm:$0xff] %v527_v10  ;;  %v736_v54 = vadd.f32 %v735_v3, %v1381_v21  ;;  %v784_v7 = vadd.f32 %v783_v5, %v1381_v21 }
 0x1f5   :  { %929 = vst [vmem:[#allocation8 + $0x3d0] sm:$0xff] %v736_v54 }
 0x1f6   :  { %977 = vst [vmem:[#allocation8 + $0x550] sm:$0xff] %v784_v7 }
 0x1f7   :  { %v320_v9 = vpop.f32.mrf.mxu0 }
 0x1f8   :  { %v321_v11 = vadd.f32 %v320_v9, %v1376_v18  ;;  %v529_v13 = vpop.f32.mrf.mxu1 }
 0x1f9   :  { %v530_v4 = vadd.f32 %v529_v13, %v1378_v19 }
 0x1fa   :  { %930 = vst [vmem:[#allocation8 + $0x3d8] sm:$0xff] %v321_v11  ;;  %v738_v15 = vpop.f32.mrf.mxu2  ;;  %v786_v16 = vpop.f32.mrf.mxu3 }
 0x1fb   :  { %931 = vst [vmem:[#allocation8 + $0x3e0] sm:$0xff] %v530_v4  ;;  %v739_v12 = vadd.f32 %v738_v15, %v1381_v21  ;;  %v787_v17 = vadd.f32 %v786_v16, %v1381_v21 }
 0x1fd   :  { %932 = vst [vmem:[#allocation8 + $0x3e8] sm:$0xff] %v739_v12 }
 0x1fe   :  { %980 = vst [vmem:[#allocation8 + $0x568] sm:$0xff] %v787_v17 }
 0x1ff   :  { %v323_v56 = vpop.f32.mrf.mxu0 }
 0x200   :  { %v324_v20 = vadd.f32 %v323_v56, %v1376_v18  ;;  %v532_v22 = vpop.f32.mrf.mxu1 }
 0x201   :  { %v533_v23 = vadd.f32 %v532_v22, %v1378_v19 }
 0x202   :  { %933 = vst [vmem:[#allocation8 + $0x3f0] sm:$0xff] %v324_v20  ;;  %v741_v6 = vpop.f32.mrf.mxu2  ;;  %v789_v24 = vpop.f32.mrf.mxu3 }
 0x203   :  { %934 = vst [vmem:[#allocation8 + $0x3f8] sm:$0xff] %v533_v23  ;;  %v742_v25 = vadd.f32 %v741_v6, %v1381_v21  ;;  %v790_v26 = vadd.f32 %v789_v24, %v1381_v21 }
 0x205   :  { %935 = vst [vmem:[#allocation8 + $0x400] sm:$0xff] %v742_v25 }
 0x206   :  { %983 = vst [vmem:[#allocation8 + $0x580] sm:$0xff] %v790_v26 }
 0x207   :  { %v326_v27 = vpop.f32.mrf.mxu0 }
 0x208   :  { %v327_v14 = vadd.f32 %v326_v27, %v1376_v18  ;;  %v535_v58 = vpop.f32.mrf.mxu1 }
 0x209   :  { %v536_v28 = vadd.f32 %v535_v58, %v1378_v19 }
 0x20a   :  { %936 = vst [vmem:[#allocation8 + $0x408] sm:$0xff] %v327_v14  ;;  %v744_v29 = vpop.f32.mrf.mxu2  ;;  %v792_v8 = vpop.f32.mrf.mxu3 }
 0x20b   :  { %937 = vst [vmem:[#allocation8 + $0x410] sm:$0xff] %v536_v28  ;;  %v745_v30 = vadd.f32 %v744_v29, %v1381_v21  ;;  %v793_v31 = vadd.f32 %v792_v8, %v1381_v21 }
 0x20d   :  { %938 = vst [vmem:[#allocation8 + $0x418] sm:$0xff] %v745_v30 }
 0x20e   :  { %986 = vst [vmem:[#allocation8 + $0x598] sm:$0xff] %v793_v31 }
 0x20f   :  { %v329_v32 = vpop.f32.mrf.mxu0 }
 0x210   :  { %v330_v33 = vadd.f32 %v329_v32, %v1376_v18  ;;  %v538_v34 = vpop.f32.mrf.mxu1 }
 0x211   :  { %v539_v35 = vadd.f32 %v538_v34, %v1378_v19 }
 0x212   :  { %939 = vst [vmem:[#allocation8 + $0x420] sm:$0xff] %v330_v33  ;;  %v747_v60 = vpop.f32.mrf.mxu2  ;;  %v795_v46 = vpop.f32.mrf.mxu3 }
 0x213   :  { %940 = vst [vmem:[#allocation8 + $0x428] sm:$0xff] %v539_v35  ;;  %v748_v36 = vadd.f32 %v747_v60, %v1381_v21  ;;  %v796_v37 = vadd.f32 %v795_v46, %v1381_v21 }
 0x215   :  { %941 = vst [vmem:[#allocation8 + $0x430] sm:$0xff] %v748_v36 }
 0x216   :  { %989 = vst [vmem:[#allocation8 + $0x5b0] sm:$0xff] %v796_v37 }
 0x217   :  { %v332_v38 = vpop.f32.mrf.mxu0 }
 0x218   :  { %v333_v39 = vadd.f32 %v332_v38, %v1376_v18  ;;  %v541_v40 = vpop.f32.mrf.mxu1 }
 0x219   :  { %v542_v41 = vadd.f32 %v541_v40, %v1378_v19 }
 0x21a   :  { %942 = vst [vmem:[#allocation8 + $0x438] sm:$0xff] %v333_v39  ;;  %v750_v42 = vpop.f32.mrf.mxu2  ;;  %v798_v62 = vpop.f32.mrf.mxu3 }
 0x21b   :  { %943 = vst [vmem:[#allocation8 + $0x440] sm:$0xff] %v542_v41  ;;  %v751_v43 = vadd.f32 %v750_v42, %v1381_v21  ;;  %v799_v50 = vadd.f32 %v798_v62, %v1381_v21 }
 0x21d   :  { %944 = vst [vmem:[#allocation8 + $0x448] sm:$0xff] %v751_v43 }
 0x21e   :  { %992 = vst [vmem:[#allocation8 + $0x5c8] sm:$0xff] %v799_v50 }
 0x21f   :  { %v335_v44 = vpop.f32.mrf.mxu0 }
 0x220   :  { %v336_v45 = vadd.f32 %v335_v44, %v1376_v18  ;;  %v544_v47 = vpop.f32.mrf.mxu1 }
 0x221   :  { %v545_v48 = vadd.f32 %v544_v47, %v1378_v19 }
 0x222   :  { %945 = vst [vmem:[#allocation8 + $0x450] sm:$0xff] %v336_v45  ;;  %v753_v49 = vpop.f32.mrf.mxu2  ;;  %v801_v51 = vpop.f32.mrf.mxu3 }
 0x223   :  { %946 = vst [vmem:[#allocation8 + $0x458] sm:$0xff] %v545_v48  ;;  %v754_v0 = vadd.f32 %v753_v49, %v1381_v21  ;;  %v802_v53 = vadd.f32 %v801_v51, %v1381_v21 }
 0x225   :  { %947 = vst [vmem:[#allocation8 + $0x460] sm:$0xff] %v754_v0 }
 0x226   :  { %995 = vst [vmem:[#allocation8 + $0x5e0] sm:$0xff] %v802_v53 }
 0x227   :  { %v338_v55 = vpop.f32.mrf.mxu0 }
 0x228   :  { %v339_v52 = vadd.f32 %v338_v55, %v1376_v18  ;;  %v547_v57 = vpop.f32.mrf.mxu1 }
 0x229   :  { %v548_v59 = vadd.f32 %v547_v57, %v1378_v19 }
 0x22a   :  { %948 = vst [vmem:[#allocation8 + $0x468] sm:$0xff] %v339_v52  ;;  %v756_v61 = vpop.f32.mrf.mxu2  ;;  %v804_v63 = vpop.f32.mrf.mxu3 }
 0x22b   :  { %949 = vst [vmem:[#allocation8 + $0x470] sm:$0xff] %v548_v59  ;;  %v757_v1 = vadd.f32 %v756_v61, %v1381_v21  ;;  %v805_v2 = vadd.f32 %v804_v63, %v1381_v21 }
 0x22d   :  { %950 = vst [vmem:[#allocation8 + $0x478] sm:$0xff] %v757_v1 }
 0x22e   :  { %998 = vst [vmem:[#allocation8 + $0x5f8] sm:$0xff] %v805_v2 }
 0x22f   :  { %1011 = dma.vmem_to_hbm [thread:$0]  %s1004_s29, 24576, %s1006_s5, [#allocation4], %s1181_s20, %s1181_s20, %s1182_s21  }
 0x230   :  { %1178 = dma.done.wait [#allocation4], 24576  }
 0x231   :  { %1179 = vsyncadd [#allocation4], 4294942720 }
 0x232   :  { %1016 = vsyncpa [#allocation3], 1 }
 0x233   :  { %1017 = vsyncpa [#allocation6], 1 }
 0x234   :  { %1018 = vsyncpa [#allocation4], 1 }

</bundles_post_ra>
